<compile_context>
chip_gen: v5e
topology: v5e:2x2
jax: 0.10.0
libtpu: 0.0.40
codegen_flags: <defaults>
</compile_context>

<pallas_src>
import functools

import jax
import jax.numpy as jnp
from jax import lax
from jax.experimental import pallas as pl
from jax.experimental.pallas import tpu as pltpu

HIDDEN = 32


def _lstm_kernel(x_ref,      # (T*Bp, D)   time-major, batch-padded, flattened input
                 wih1_ref,   # (D, 4H)
                 whh1_ref,   # (H, 4H)
                 b1_ref,     # (1, 4H)     pre-summed bias_ih + bias_hh (layer 0)
                 wih2_ref,   # (H, 4H)
                 whh2_ref,   # (H, 4H)
                 b2_ref,     # (1, 4H)     pre-summed bias_ih + bias_hh (layer 1)
                 fcw_ref,    # (1, H)      fc weight as a lane row
                 fcb_ref,    # (1, 1)
                 out_ref,    # (Bp, 1)
                 g1x_ref,    # VMEM scratch (T*Bp, 4H): hoisted layer-1 input projection
                 *, T, Bp):
    H = HIDDEN
    G = 4 * H

    # ---- pre-pass: layer-1 input projection for ALL timesteps (one big MXU matmul) ----
    g1x_ref[...] = (jnp.dot(x_ref[...], wih1_ref[...],
                            preferred_element_type=jnp.float32)
                    + b1_ref[...])

    # ---- hoisted constants for the fused sigmoid/tanh gate activation ----
    # PyTorch gate order is (i, f, g, o): lanes [2H, 3H) get tanh, the rest get sigmoid.
    lane = lax.broadcasted_iota(jnp.int32, (Bp, G), 1)
    is_g = (lane >= 2 * H) & (lane < 3 * H)
    pre_scale = jnp.where(is_g, 1.0, 0.5).astype(jnp.float32)   # 0.5*x for sigmoid lanes
    post_off = jnp.where(is_g, 0.0, 0.5).astype(jnp.float32)    # +0.5 for sigmoid lanes

    def gate_act(g):
        # One EUP pass over the whole 128-lane gate vreg:
        #   sigmoid lanes: 0.5 * (tanh(0.5*x) + 1)   ;   cell-candidate lanes: tanh(x)
        t = jnp.tanh(g * pre_scale)
        return t * pre_scale + post_off

    def step(t, carry):
        h1, h2, c1, c2 = carry
        row = pl.multiple_of(t * Bp, Bp)      # sublane-aligned dynamic offset into g1x

        # Both recurrent matmuls depend only on previous-step state -> issue together so the
        # two MXU pushes overlap with each other and with the layer-1 gate math.
        rec1 = jnp.dot(h1, whh1_ref[...], preferred_element_type=jnp.float32)
        rec2 = jnp.dot(h2, whh2_ref[...], preferred_element_type=jnp.float32)

        # ----- layer 1 -----
        g1 = g1x_ref[pl.ds(row, Bp), :] + rec1
        a1 = gate_act(g1)
        i1 = a1[:, 0 * H:1 * H]
        f1 = a1[:, 1 * H:2 * H]
        gg1 = a1[:, 2 * H:3 * H]
        o1 = a1[:, 3 * H:4 * H]
        c1n = f1 * c1 + i1 * gg1
        h1n = o1 * jnp.tanh(c1n)

        # ----- layer 2 (input matmul only once h1_new is ready) -----
        g2 = (jnp.dot(h1n, wih2_ref[...], preferred_element_type=jnp.float32)
              + rec2 + b2_ref[...])
        a2 = gate_act(g2)
        i2 = a2[:, 0 * H:1 * H]
        f2 = a2[:, 1 * H:2 * H]
        gg2 = a2[:, 2 * H:3 * H]
        o2 = a2[:, 3 * H:4 * H]
        c2n = f2 * c2 + i2 * gg2
        h2n = o2 * jnp.tanh(c2n)

        return (h1n, h2n, c1n, c2n)

    z = jnp.zeros((Bp, H), jnp.float32)
    unroll = T if T <= 8 else 8
    _, h2_last, _, _ = lax.fori_loop(0, T, step, (z, z, z, z), unroll=unroll)

    # ----- last timestep: dropout (identity, eval mode) + fc as VPU mul + lane reduction -----
    out_ref[...] = (jnp.sum(h2_last * fcw_ref[...], axis=-1, keepdims=True)
                    + fcb_ref[...])


def lstm_model_forward(x, params):
    """x: [B, T, D] float32 (batch_first, like PyTorch). Returns [B, 1]."""
    B, T, D = x.shape
    H = HIDDEN
    Bp = ((B + 7) // 8) * 8                      # pad batch to a sublane multiple

    wih1, whh1, b1, wih2, whh2, b2, fcw, fcb = params

    x_tmaj = jnp.transpose(x, (1, 0, 2))         # (T, B, D)
    x_pad = jnp.pad(x_tmaj, ((0, 0), (0, Bp - B), (0, 0)))
    x2d = x_pad.reshape(T * Bp, D)               # (T*Bp, D)

    kernel = functools.partial(_lstm_kernel, T=T, Bp=Bp)
    vmem_spec = pl.BlockSpec(memory_space=pltpu.MemorySpace.VMEM)

    # Explicit VMEM budget: lane-padded x2d + resident g1x + weights + headroom.
    d_pad = ((max(D, 128) + 127) // 128) * 128
    footprint = 4 * (T * Bp * d_pad + T * Bp * 4 * H) + 4 * (d_pad + 4 * H) * 4 * H
    vmem_limit = int(min(100 * (1 << 20), max(32 * (1 << 20), 2 * footprint)))

    out = pl.pallas_call(
        kernel,
        out_shape=jax.ShapeDtypeStruct((Bp, 1), jnp.float32),
        in_specs=[vmem_spec] * 9,
        out_specs=vmem_spec,
        scratch_shapes=[
            pltpu.VMEM((T * Bp, 4 * H), jnp.float32),   # g1x: hoisted layer-1 input projection
        ],
        compiler_params=pltpu.CompilerParams(vmem_limit_bytes=vmem_limit),
    )(x2d, wih1, whh1, b1, wih2, whh2, b2, fcw, fcb)
    return out[:B]


def init_params(key, input_dim, hidden=HIDDEN):
    """Deterministic init matching PyTorch LSTM/Linear parameter shapes.

    Weights are pre-transposed so the kernel does x @ W (instead of x @ W.T), the PyTorch
    bias_ih + bias_hh pair is pre-summed per layer (independent keys per draw), and the fc
    weight is stored as a (1, H) lane row for the VPU-reduction FC.
    """
    ks = jax.random.split(key, 10)
    bound = 1.0 / jnp.sqrt(hidden)
    u = lambda k, shape: jax.random.uniform(k, shape, jnp.float32, -bound, bound)
    # layer 0: weight_ih_l0 [4H, D] -> transposed [D, 4H]
    wih1 = u(ks[0], (input_dim, 4 * hidden))
    whh1 = u(ks[1], (hidden, 4 * hidden))
    b1 = u(ks[2], (1, 4 * hidden)) + u(ks[3], (1, 4 * hidden))
    # layer 1: weight_ih_l1 [4H, H] -> transposed [H, 4H]
    wih2 = u(ks[4], (hidden, 4 * hidden))
    whh2 = u(ks[5], (hidden, 4 * hidden))
    b2 = u(ks[6], (1, 4 * hidden)) + u(ks[7], (1, 4 * hidden))
    # fc: weight [1, H] kept as a row; bias [1] -> [1, 1]
    fcw = u(ks[8], (1, hidden))
    fcb = u(ks[9], (1, 1))
    return (wih1, whh1, b1, wih2, whh2, b2, fcw, fcb)


def _reference_forward(x, params):
    """Pure-JAX reference (lax.scan) mirroring PyTorch nn.LSTM gate order i, f, g, o."""
    wih1, whh1, b1, wih2, whh2, b2, fcw, fcb = params
    B, T, D = x.shape
    H = HIDDEN

    def cell(carry, x_t, wih, whh, b):
        h, c = carry
        g = x_t @ wih + h @ whh + b
        i = jax.nn.sigmoid(g[:, 0 * H:1 * H])
        f = jax.nn.sigmoid(g[:, 1 * H:2 * H])
        gg = jnp.tanh(g[:, 2 * H:3 * H])
        o = jax.nn.sigmoid(g[:, 3 * H:4 * H])
        c = f * c + i * gg
        h = o * jnp.tanh(c)
        return (h, c)

    def step(carry, x_t):
        (h1, c1), (h2, c2) = carry
        h1, c1 = cell((h1, c1), x_t, wih1, whh1, b1)
        h2, c2 = cell((h2, c2), h1, wih2, whh2, b2)
        return ((h1, c1), (h2, c2)), h2

    z = jnp.zeros((B, H), jnp.float32)
    (_, _), hs = jax.lax.scan(step, ((z, z), (z, z)), jnp.transpose(x, (1, 0, 2)))
    last = hs[-1]                   # [B, H]
    return last @ fcw.T + fcb       # dropout is identity in eval mode


if __name__ == "__main__":
    key = jax.random.PRNGKey(0)
    B, T, D = 2, 8, 16   # batch, seq len, input_dim (features.csv column count stand-in)

    kx, kp = jax.random.split(key)
    x = jax.random.normal(kx, (B, T, D), jnp.float32)
    params = init_params(kp, D)

    out = lstm_model_forward(x, params)
    out = jax.block_until_ready(out)

    ref = _reference_forward(x, params)
    assert out.shape == (B, 1)
    # Slightly relaxed tolerance: kernel computes sigmoid via 0.5*(tanh(x/2)+1) on the EUP.
    assert jnp.allclose(out, ref, atol=1e-4, rtol=1e-4), (out, ref)

    print("KERNEL_OK")
</pallas_src>

<mosaic_0001>
module attributes {stable_mosaic.version = 11 : i64} {
  func.func @_lstm_kernel(%arg0: memref<64x16xf32, #tpu.memory_space<vmem>>, %arg1: memref<16x128xf32, #tpu.memory_space<vmem>>, %arg2: memref<32x128xf32, #tpu.memory_space<vmem>>, %arg3: memref<1x128xf32, #tpu.memory_space<vmem>>, %arg4: memref<32x128xf32, #tpu.memory_space<vmem>>, %arg5: memref<32x128xf32, #tpu.memory_space<vmem>>, %arg6: memref<1x128xf32, #tpu.memory_space<vmem>>, %arg7: memref<1x32xf32, #tpu.memory_space<vmem>>, %arg8: memref<1x1xf32, #tpu.memory_space<vmem>>, %arg9: memref<8x1xf32, #tpu.memory_space<vmem>>, %arg10: memref<64x128xf32, #tpu.memory_space<vmem>>) attributes {dimension_semantics = [], scalar_prefetch = 0 : i64, scratch_operands = 1 : i64, tpu.core_type = #tpu.core_type<tc>} {
    %c0 = arith.constant 0 : index
    %c0_0 = arith.constant 0 : index
    %0 = vector.load %arg0[%c0, %c0_0] : memref<64x16xf32, #tpu.memory_space<vmem>>, vector<64x16xf32>
    %c0_1 = arith.constant 0 : index
    %c0_2 = arith.constant 0 : index
    %1 = vector.load %arg1[%c0_1, %c0_2] : memref<16x128xf32, #tpu.memory_space<vmem>>, vector<16x128xf32>
    %cst = arith.constant dense<0.000000e+00> : vector<64x128xf32>
    %2 = tpu.matmul %0, %1, %cst {dimension_numbers = #tpu.dot_dimension_numbers<[1], [0], [0], [1], [0, 0, 1, 1], [], []>} : vector<64x16xf32>, vector<16x128xf32>, vector<64x128xf32> -> vector<64x128xf32>
    %c0_3 = arith.constant 0 : index
    %c0_4 = arith.constant 0 : index
    %3 = vector.load %arg3[%c0_3, %c0_4] : memref<1x128xf32, #tpu.memory_space<vmem>>, vector<1x128xf32>
    %4 = vector.broadcast %3 : vector<1x128xf32> to vector<64x128xf32>
    %5 = arith.addf %2, %4 : vector<64x128xf32>
    %c0_5 = arith.constant 0 : index
    %c0_6 = arith.constant 0 : index
    %6 = vector.load %arg10[%c0_5, %c0_6] : memref<64x128xf32, #tpu.memory_space<vmem>>, vector<64x128xf32>
    tpu.vector_store %arg10[%c0_5, %c0_6], %5 {strides = array<i32>} : memref<64x128xf32, #tpu.memory_space<vmem>>, vector<64x128xf32>,
    %7 = tpu.iota {dimensions = array<i32: 1>} : vector<8x128xi32>
    %c64_i32 = arith.constant 64 : i32
    %8 = vector.broadcast %c64_i32 : i32 to vector<8x128xi32>
    %9 = arith.cmpi sge, %7, %8 : vector<8x128xi32>
    %c96_i32 = arith.constant 96 : i32
    %10 = vector.broadcast %c96_i32 : i32 to vector<8x128xi32>
    %11 = arith.cmpi slt, %7, %10 : vector<8x128xi32>
    %12 = arith.andi %9, %11 : vector<8x128xi1>
    %cst_7 = arith.constant 1.000000e+00 : f32
    %cst_8 = arith.constant 5.000000e-01 : f32
    %13 = vector.broadcast %cst_7 : f32 to vector<8x128xf32>
    %14 = vector.broadcast %cst_8 : f32 to vector<8x128xf32>
    %15 = arith.select %12, %13, %14 : vector<8x128xi1>, vector<8x128xf32>
    %cst_9 = arith.constant 0.000000e+00 : f32
    %cst_10 = arith.constant 5.000000e-01 : f32
    %16 = vector.broadcast %cst_9 : f32 to vector<8x128xf32>
    %17 = vector.broadcast %cst_10 : f32 to vector<8x128xf32>
    %18 = arith.select %12, %16, %17 : vector<8x128xi1>, vector<8x128xf32>
    %cst_11 = arith.constant 0.000000e+00 : f32
    %19 = vector.broadcast %cst_11 : f32 to vector<8x32xf32>
    %c0_i32 = arith.constant 0 : i32
    %c8_i32 = arith.constant 8 : i32
    %20 = arith.muli %c0_i32, %c8_i32 : i32
    %21 = tpu.assume_multiple %20, 8 : i32
    %c0_12 = arith.constant 0 : index
    %c0_13 = arith.constant 0 : index
    %22 = vector.load %arg2[%c0_12, %c0_13] : memref<32x128xf32, #tpu.memory_space<vmem>>, vector<32x128xf32>
    %cst_14 = arith.constant dense<0.000000e+00> : vector<8x128xf32>
    %23 = tpu.matmul %19, %22, %cst_14 {dimension_numbers = #tpu.dot_dimension_numbers<[1], [0], [0], [1], [0, 0, 1, 1], [], []>} : vector<8x32xf32>, vector<32x128xf32>, vector<8x128xf32> -> vector<8x128xf32>
    %c0_15 = arith.constant 0 : index
    %c0_16 = arith.constant 0 : index
    %24 = vector.load %arg5[%c0_15, %c0_16] : memref<32x128xf32, #tpu.memory_space<vmem>>, vector<32x128xf32>
    %cst_17 = arith.constant dense<0.000000e+00> : vector<8x128xf32>
    %25 = tpu.matmul %19, %24, %cst_17 {dimension_numbers = #tpu.dot_dimension_numbers<[1], [0], [0], [1], [0, 0, 1, 1], [], []>} : vector<8x32xf32>, vector<32x128xf32>, vector<8x128xf32> -> vector<8x128xf32>
    %26 = arith.index_cast %21 : i32 to index
    %c0_18 = arith.constant 0 : index
    %27 = vector.load %arg10[%26, %c0_18] : memref<64x128xf32, #tpu.memory_space<vmem>>, vector<8x128xf32>
    %28 = arith.addf %27, %23 : vector<8x128xf32>
    %29 = arith.mulf %28, %15 : vector<8x128xf32>
    %30 = math.tanh %29 : vector<8x128xf32>
    %31 = arith.mulf %30, %15 : vector<8x128xf32>
    %32 = arith.addf %31, %18 : vector<8x128xf32>
    %33 = vector.extract_strided_slice %32 {offsets = [0, 0], sizes = [8, 32], strides = [1, 1]} : vector<8x128xf32> to vector<8x32xf32>
    %34 = vector.extract_strided_slice %32 {offsets = [0, 32], sizes = [8, 32], strides = [1, 1]} : vector<8x128xf32> to vector<8x32xf32>
    %35 = vector.extract_strided_slice %32 {offsets = [0, 64], sizes = [8, 32], strides = [1, 1]} : vector<8x128xf32> to vector<8x32xf32>
    %36 = vector.extract_strided_slice %32 {offsets = [0, 96], sizes = [8, 32], strides = [1, 1]} : vector<8x128xf32> to vector<8x32xf32>
    %37 = arith.mulf %34, %19 : vector<8x32xf32>
    %38 = arith.mulf %33, %35 : vector<8x32xf32>
    %39 = arith.addf %37, %38 : vector<8x32xf32>
    %40 = math.tanh %39 : vector<8x32xf32>
    %41 = arith.mulf %36, %40 : vector<8x32xf32>
    %c0_19 = arith.constant 0 : index
    %c0_20 = arith.constant 0 : index
    %42 = vector.load %arg4[%c0_19, %c0_20] : memref<32x128xf32, #tpu.memory_space<vmem>>, vector<32x128xf32>
    %cst_21 = arith.constant dense<0.000000e+00> : vector<8x128xf32>
    %43 = tpu.matmul %41, %42, %cst_21 {dimension_numbers = #tpu.dot_dimension_numbers<[1], [0], [0], [1], [0, 0, 1, 1], [], []>} : vector<8x32xf32>, vector<32x128xf32>, vector<8x128xf32> -> vector<8x128xf32>
    %44 = arith.addf %43, %25 : vector<8x128xf32>
    %c0_22 = arith.constant 0 : index
    %c0_23 = arith.constant 0 : index
    %45 = vector.load %arg6[%c0_22, %c0_23] : memref<1x128xf32, #tpu.memory_space<vmem>>, vector<1x128xf32>
    %46 = vector.broadcast %45 : vector<1x128xf32> to vector<8x128xf32>
    %47 = arith.addf %44, %46 : vector<8x128xf32>
    %48 = arith.mulf %47, %15 : vector<8x128xf32>
    %49 = math.tanh %48 : vector<8x128xf32>
    %50 = arith.mulf %49, %15 : vector<8x128xf32>
    %51 = arith.addf %50, %18 : vector<8x128xf32>
    %52 = vector.extract_strided_slice %51 {offsets = [0, 0], sizes = [8, 32], strides = [1, 1]} : vector<8x128xf32> to vector<8x32xf32>
    %53 = vector.extract_strided_slice %51 {offsets = [0, 32], sizes = [8, 32], strides = [1, 1]} : vector<8x128xf32> to vector<8x32xf32>
    %54 = vector.extract_strided_slice %51 {offsets = [0, 64], sizes = [8, 32], strides = [1, 1]} : vector<8x128xf32> to vector<8x32xf32>
    %55 = vector.extract_strided_slice %51 {offsets = [0, 96], sizes = [8, 32], strides = [1, 1]} : vector<8x128xf32> to vector<8x32xf32>
    %56 = arith.mulf %53, %19 : vector<8x32xf32>
    %57 = arith.mulf %52, %54 : vector<8x32xf32>
    %58 = arith.addf %56, %57 : vector<8x32xf32>
    %59 = math.tanh %58 : vector<8x32xf32>
    %60 = arith.mulf %55, %59 : vector<8x32xf32>
    %c1_i32 = arith.constant 1 : i32
    %c8_i32_24 = arith.constant 8 : i32
    %61 = arith.muli %c1_i32, %c8_i32_24 : i32
    %62 = tpu.assume_multiple %61, 8 : i32
    %c0_25 = arith.constant 0 : index
    %c0_26 = arith.constant 0 : index
    %63 = vector.load %arg2[%c0_25, %c0_26] : memref<32x128xf32, #tpu.memory_space<vmem>>, vector<32x128xf32>
    %cst_27 = arith.constant dense<0.000000e+00> : vector<8x128xf32>
    %64 = tpu.matmul %41, %63, %cst_27 {dimension_numbers = #tpu.dot_dimension_numbers<[1], [0], [0], [1], [0, 0, 1, 1], [], []>} : vector<8x32xf32>, vector<32x128xf32>, vector<8x128xf32> -> vector<8x128xf32>
    %c0_28 = arith.constant 0 : index
    %c0_29 = arith.constant 0 : index
    %65 = vector.load %arg5[%c0_28, %c0_29] : memref<32x128xf32, #tpu.memory_space<vmem>>, vector<32x128xf32>
    %cst_30 = arith.constant dense<0.000000e+00> : vector<8x128xf32>
    %66 = tpu.matmul %60, %65, %cst_30 {dimension_numbers = #tpu.dot_dimension_numbers<[1], [0], [0], [1], [0, 0, 1, 1], [], []>} : vector<8x32xf32>, vector<32x128xf32>, vector<8x128xf32> -> vector<8x128xf32>
    %67 = arith.index_cast %62 : i32 to index
    %c0_31 = arith.constant 0 : index
    %68 = vector.load %arg10[%67, %c0_31] : memref<64x128xf32, #tpu.memory_space<vmem>>, vector<8x128xf32>
    %69 = arith.addf %68, %64 : vector<8x128xf32>
    %70 = arith.mulf %69, %15 : vector<8x128xf32>
    %71 = math.tanh %70 : vector<8x128xf32>
    %72 = arith.mulf %71, %15 : vector<8x128xf32>
    %73 = arith.addf %72, %18 : vector<8x128xf32>
    %74 = vector.extract_strided_slice %73 {offsets = [0, 0], sizes = [8, 32], strides = [1, 1]} : vector<8x128xf32> to vector<8x32xf32>
    %75 = vector.extract_strided_slice %73 {offsets = [0, 32], sizes = [8, 32], strides = [1, 1]} : vector<8x128xf32> to vector<8x32xf32>
    %76 = vector.extract_strided_slice %73 {offsets = [0, 64], sizes = [8, 32], strides = [1, 1]} : vector<8x128xf32> to vector<8x32xf32>
    %77 = vector.extract_strided_slice %73 {offsets = [0, 96], sizes = [8, 32], strides = [1, 1]} : vector<8x128xf32> to vector<8x32xf32>
    %78 = arith.mulf %75, %39 : vector<8x32xf32>
    %79 = arith.mulf %74, %76 : vector<8x32xf32>
    %80 = arith.addf %78, %79 : vector<8x32xf32>
    %81 = math.tanh %80 : vector<8x32xf32>
    %82 = arith.mulf %77, %81 : vector<8x32xf32>
    %c0_32 = arith.constant 0 : index
    %c0_33 = arith.constant 0 : index
    %83 = vector.load %arg4[%c0_32, %c0_33] : memref<32x128xf32, #tpu.memory_space<vmem>>, vector<32x128xf32>
    %cst_34 = arith.constant dense<0.000000e+00> : vector<8x128xf32>
    %84 = tpu.matmul %82, %83, %cst_34 {dimension_numbers = #tpu.dot_dimension_numbers<[1], [0], [0], [1], [0, 0, 1, 1], [], []>} : vector<8x32xf32>, vector<32x128xf32>, vector<8x128xf32> -> vector<8x128xf32>
    %85 = arith.addf %84, %66 : vector<8x128xf32>
    %c0_35 = arith.constant 0 : index
    %c0_36 = arith.constant 0 : index
    %86 = vector.load %arg6[%c0_35, %c0_36] : memref<1x128xf32, #tpu.memory_space<vmem>>, vector<1x128xf32>
    %87 = vector.broadcast %86 : vector<1x128xf32> to vector<8x128xf32>
    %88 = arith.addf %85, %87 : vector<8x128xf32>
    %89 = arith.mulf %88, %15 : vector<8x128xf32>
    %90 = math.tanh %89 : vector<8x128xf32>
    %91 = arith.mulf %90, %15 : vector<8x128xf32>
    %92 = arith.addf %91, %18 : vector<8x128xf32>
    %93 = vector.extract_strided_slice %92 {offsets = [0, 0], sizes = [8, 32], strides = [1, 1]} : vector<8x128xf32> to vector<8x32xf32>
    %94 = vector.extract_strided_slice %92 {offsets = [0, 32], sizes = [8, 32], strides = [1, 1]} : vector<8x128xf32> to vector<8x32xf32>
    %95 = vector.extract_strided_slice %92 {offsets = [0, 64], sizes = [8, 32], strides = [1, 1]} : vector<8x128xf32> to vector<8x32xf32>
    %96 = vector.extract_strided_slice %92 {offsets = [0, 96], sizes = [8, 32], strides = [1, 1]} : vector<8x128xf32> to vector<8x32xf32>
    %97 = arith.mulf %94, %58 : vector<8x32xf32>
    %98 = arith.mulf %93, %95 : vector<8x32xf32>
    %99 = arith.addf %97, %98 : vector<8x32xf32>
    %100 = math.tanh %99 : vector<8x32xf32>
    %101 = arith.mulf %96, %100 : vector<8x32xf32>
    %c2_i32 = arith.constant 2 : i32
    %c8_i32_37 = arith.constant 8 : i32
    %102 = arith.muli %c2_i32, %c8_i32_37 : i32
    %103 = tpu.assume_multiple %102, 8 : i32
    %c0_38 = arith.constant 0 : index
    %c0_39 = arith.constant 0 : index
    %104 = vector.load %arg2[%c0_38, %c0_39] : memref<32x128xf32, #tpu.memory_space<vmem>>, vector<32x128xf32>
    %cst_40 = arith.constant dense<0.000000e+00> : vector<8x128xf32>
    %105 = tpu.matmul %82, %104, %cst_40 {dimension_numbers = #tpu.dot_dimension_numbers<[1], [0], [0], [1], [0, 0, 1, 1], [], []>} : vector<8x32xf32>, vector<32x128xf32>, vector<8x128xf32> -> vector<8x128xf32>
    %c0_41 = arith.constant 0 : index
    %c0_42 = arith.constant 0 : index
    %106 = vector.load %arg5[%c0_41, %c0_42] : memref<32x128xf32, #tpu.memory_space<vmem>>, vector<32x128xf32>
    %cst_43 = arith.constant dense<0.000000e+00> : vector<8x128xf32>
    %107 = tpu.matmul %101, %106, %cst_43 {dimension_numbers = #tpu.dot_dimension_numbers<[1], [0], [0], [1], [0, 0, 1, 1], [], []>} : vector<8x32xf32>, vector<32x128xf32>, vector<8x128xf32> -> vector<8x128xf32>
    %108 = arith.index_cast %103 : i32 to index
    %c0_44 = arith.constant 0 : index
    %109 = vector.load %arg10[%108, %c0_44] : memref<64x128xf32, #tpu.memory_space<vmem>>, vector<8x128xf32>
    %110 = arith.addf %109, %105 : vector<8x128xf32>
    %111 = arith.mulf %110, %15 : vector<8x128xf32>
    %112 = math.tanh %111 : vector<8x128xf32>
    %113 = arith.mulf %112, %15 : vector<8x128xf32>
    %114 = arith.addf %113, %18 : vector<8x128xf32>
    %115 = vector.extract_strided_slice %114 {offsets = [0, 0], sizes = [8, 32], strides = [1, 1]} : vector<8x128xf32> to vector<8x32xf32>
    %116 = vector.extract_strided_slice %114 {offsets = [0, 32], sizes = [8, 32], strides = [1, 1]} : vector<8x128xf32> to vector<8x32xf32>
    %117 = vector.extract_strided_slice %114 {offsets = [0, 64], sizes = [8, 32], strides = [1, 1]} : vector<8x128xf32> to vector<8x32xf32>
    %118 = vector.extract_strided_slice %114 {offsets = [0, 96], sizes = [8, 32], strides = [1, 1]} : vector<8x128xf32> to vector<8x32xf32>
    %119 = arith.mulf %116, %80 : vector<8x32xf32>
    %120 = arith.mulf %115, %117 : vector<8x32xf32>
    %121 = arith.addf %119, %120 : vector<8x32xf32>
    %122 = math.tanh %121 : vector<8x32xf32>
    %123 = arith.mulf %118, %122 : vector<8x32xf32>
    %c0_45 = arith.constant 0 : index
    %c0_46 = arith.constant 0 : index
    %124 = vector.load %arg4[%c0_45, %c0_46] : memref<32x128xf32, #tpu.memory_space<vmem>>, vector<32x128xf32>
    %cst_47 = arith.constant dense<0.000000e+00> : vector<8x128xf32>
    %125 = tpu.matmul %123, %124, %cst_47 {dimension_numbers = #tpu.dot_dimension_numbers<[1], [0], [0], [1], [0, 0, 1, 1], [], []>} : vector<8x32xf32>, vector<32x128xf32>, vector<8x128xf32> -> vector<8x128xf32>
    %126 = arith.addf %125, %107 : vector<8x128xf32>
    %c0_48 = arith.constant 0 : index
    %c0_49 = arith.constant 0 : index
    %127 = vector.load %arg6[%c0_48, %c0_49] : memref<1x128xf32, #tpu.memory_space<vmem>>, vector<1x128xf32>
    %128 = vector.broadcast %127 : vector<1x128xf32> to vector<8x128xf32>
    %129 = arith.addf %126, %128 : vector<8x128xf32>
    %130 = arith.mulf %129, %15 : vector<8x128xf32>
    %131 = math.tanh %130 : vector<8x128xf32>
    %132 = arith.mulf %131, %15 : vector<8x128xf32>
    %133 = arith.addf %132, %18 : vector<8x128xf32>
    %134 = vector.extract_strided_slice %133 {offsets = [0, 0], sizes = [8, 32], strides = [1, 1]} : vector<8x128xf32> to vector<8x32xf32>
    %135 = vector.extract_strided_slice %133 {offsets = [0, 32], sizes = [8, 32], strides = [1, 1]} : vector<8x128xf32> to vector<8x32xf32>
    %136 = vector.extract_strided_slice %133 {offsets = [0, 64], sizes = [8, 32], strides = [1, 1]} : vector<8x128xf32> to vector<8x32xf32>
    %137 = vector.extract_strided_slice %133 {offsets = [0, 96], sizes = [8, 32], strides = [1, 1]} : vector<8x128xf32> to vector<8x32xf32>
    %138 = arith.mulf %135, %99 : vector<8x32xf32>
    %139 = arith.mulf %134, %136 : vector<8x32xf32>
    %140 = arith.addf %138, %139 : vector<8x32xf32>
    %141 = math.tanh %140 : vector<8x32xf32>
    %142 = arith.mulf %137, %141 : vector<8x32xf32>
    %c3_i32 = arith.constant 3 : i32
    %c8_i32_50 = arith.constant 8 : i32
    %143 = arith.muli %c3_i32, %c8_i32_50 : i32
    %144 = tpu.assume_multiple %143, 8 : i32
    %c0_51 = arith.constant 0 : index
    %c0_52 = arith.constant 0 : index
    %145 = vector.load %arg2[%c0_51, %c0_52] : memref<32x128xf32, #tpu.memory_space<vmem>>, vector<32x128xf32>
    %cst_53 = arith.constant dense<0.000000e+00> : vector<8x128xf32>
    %146 = tpu.matmul %123, %145, %cst_53 {dimension_numbers = #tpu.dot_dimension_numbers<[1], [0], [0], [1], [0, 0, 1, 1], [], []>} : vector<8x32xf32>, vector<32x128xf32>, vector<8x128xf32> -> vector<8x128xf32>
    %c0_54 = arith.constant 0 : index
    %c0_55 = arith.constant 0 : index
    %147 = vector.load %arg5[%c0_54, %c0_55] : memref<32x128xf32, #tpu.memory_space<vmem>>, vector<32x128xf32>
    %cst_56 = arith.constant dense<0.000000e+00> : vector<8x128xf32>
    %148 = tpu.matmul %142, %147, %cst_56 {dimension_numbers = #tpu.dot_dimension_numbers<[1], [0], [0], [1], [0, 0, 1, 1], [], []>} : vector<8x32xf32>, vector<32x128xf32>, vector<8x128xf32> -> vector<8x128xf32>
    %149 = arith.index_cast %144 : i32 to index
    %c0_57 = arith.constant 0 : index
    %150 = vector.load %arg10[%149, %c0_57] : memref<64x128xf32, #tpu.memory_space<vmem>>, vector<8x128xf32>
    %151 = arith.addf %150, %146 : vector<8x128xf32>
    %152 = arith.mulf %151, %15 : vector<8x128xf32>
    %153 = math.tanh %152 : vector<8x128xf32>
    %154 = arith.mulf %153, %15 : vector<8x128xf32>
    %155 = arith.addf %154, %18 : vector<8x128xf32>
    %156 = vector.extract_strided_slice %155 {offsets = [0, 0], sizes = [8, 32], strides = [1, 1]} : vector<8x128xf32> to vector<8x32xf32>
    %157 = vector.extract_strided_slice %155 {offsets = [0, 32], sizes = [8, 32], strides = [1, 1]} : vector<8x128xf32> to vector<8x32xf32>
    %158 = vector.extract_strided_slice %155 {offsets = [0, 64], sizes = [8, 32], strides = [1, 1]} : vector<8x128xf32> to vector<8x32xf32>
    %159 = vector.extract_strided_slice %155 {offsets = [0, 96], sizes = [8, 32], strides = [1, 1]} : vector<8x128xf32> to vector<8x32xf32>
    %160 = arith.mulf %157, %121 : vector<8x32xf32>
    %161 = arith.mulf %156, %158 : vector<8x32xf32>
    %162 = arith.addf %160, %161 : vector<8x32xf32>
    %163 = math.tanh %162 : vector<8x32xf32>
    %164 = arith.mulf %159, %163 : vector<8x32xf32>
    %c0_58 = arith.constant 0 : index
    %c0_59 = arith.constant 0 : index
    %165 = vector.load %arg4[%c0_58, %c0_59] : memref<32x128xf32, #tpu.memory_space<vmem>>, vector<32x128xf32>
    %cst_60 = arith.constant dense<0.000000e+00> : vector<8x128xf32>
    %166 = tpu.matmul %164, %165, %cst_60 {dimension_numbers = #tpu.dot_dimension_numbers<[1], [0], [0], [1], [0, 0, 1, 1], [], []>} : vector<8x32xf32>, vector<32x128xf32>, vector<8x128xf32> -> vector<8x128xf32>
    %167 = arith.addf %166, %148 : vector<8x128xf32>
    %c0_61 = arith.constant 0 : index
    %c0_62 = arith.constant 0 : index
    %168 = vector.load %arg6[%c0_61, %c0_62] : memref<1x128xf32, #tpu.memory_space<vmem>>, vector<1x128xf32>
    %169 = vector.broadcast %168 : vector<1x128xf32> to vector<8x128xf32>
    %170 = arith.addf %167, %169 : vector<8x128xf32>
    %171 = arith.mulf %170, %15 : vector<8x128xf32>
    %172 = math.tanh %171 : vector<8x128xf32>
    %173 = arith.mulf %172, %15 : vector<8x128xf32>
    %174 = arith.addf %173, %18 : vector<8x128xf32>
    %175 = vector.extract_strided_slice %174 {offsets = [0, 0], sizes = [8, 32], strides = [1, 1]} : vector<8x128xf32> to vector<8x32xf32>
    %176 = vector.extract_strided_slice %174 {offsets = [0, 32], sizes = [8, 32], strides = [1, 1]} : vector<8x128xf32> to vector<8x32xf32>
    %177 = vector.extract_strided_slice %174 {offsets = [0, 64], sizes = [8, 32], strides = [1, 1]} : vector<8x128xf32> to vector<8x32xf32>
    %178 = vector.extract_strided_slice %174 {offsets = [0, 96], sizes = [8, 32], strides = [1, 1]} : vector<8x128xf32> to vector<8x32xf32>
    %179 = arith.mulf %176, %140 : vector<8x32xf32>
    %180 = arith.mulf %175, %177 : vector<8x32xf32>
    %181 = arith.addf %179, %180 : vector<8x32xf32>
    %182 = math.tanh %181 : vector<8x32xf32>
    %183 = arith.mulf %178, %182 : vector<8x32xf32>
    %c4_i32 = arith.constant 4 : i32
    %c8_i32_63 = arith.constant 8 : i32
    %184 = arith.muli %c4_i32, %c8_i32_63 : i32
    %185 = tpu.assume_multiple %184, 8 : i32
    %c0_64 = arith.constant 0 : index
    %c0_65 = arith.constant 0 : index
    %186 = vector.load %arg2[%c0_64, %c0_65] : memref<32x128xf32, #tpu.memory_space<vmem>>, vector<32x128xf32>
    %cst_66 = arith.constant dense<0.000000e+00> : vector<8x128xf32>
    %187 = tpu.matmul %164, %186, %cst_66 {dimension_numbers = #tpu.dot_dimension_numbers<[1], [0], [0], [1], [0, 0, 1, 1], [], []>} : vector<8x32xf32>, vector<32x128xf32>, vector<8x128xf32> -> vector<8x128xf32>
    %c0_67 = arith.constant 0 : index
    %c0_68 = arith.constant 0 : index
    %188 = vector.load %arg5[%c0_67, %c0_68] : memref<32x128xf32, #tpu.memory_space<vmem>>, vector<32x128xf32>
    %cst_69 = arith.constant dense<0.000000e+00> : vector<8x128xf32>
    %189 = tpu.matmul %183, %188, %cst_69 {dimension_numbers = #tpu.dot_dimension_numbers<[1], [0], [0], [1], [0, 0, 1, 1], [], []>} : vector<8x32xf32>, vector<32x128xf32>, vector<8x128xf32> -> vector<8x128xf32>
    %190 = arith.index_cast %185 : i32 to index
    %c0_70 = arith.constant 0 : index
    %191 = vector.load %arg10[%190, %c0_70] : memref<64x128xf32, #tpu.memory_space<vmem>>, vector<8x128xf32>
    %192 = arith.addf %191, %187 : vector<8x128xf32>
    %193 = arith.mulf %192, %15 : vector<8x128xf32>
    %194 = math.tanh %193 : vector<8x128xf32>
    %195 = arith.mulf %194, %15 : vector<8x128xf32>
    %196 = arith.addf %195, %18 : vector<8x128xf32>
    %197 = vector.extract_strided_slice %196 {offsets = [0, 0], sizes = [8, 32], strides = [1, 1]} : vector<8x128xf32> to vector<8x32xf32>
    %198 = vector.extract_strided_slice %196 {offsets = [0, 32], sizes = [8, 32], strides = [1, 1]} : vector<8x128xf32> to vector<8x32xf32>
    %199 = vector.extract_strided_slice %196 {offsets = [0, 64], sizes = [8, 32], strides = [1, 1]} : vector<8x128xf32> to vector<8x32xf32>
    %200 = vector.extract_strided_slice %196 {offsets = [0, 96], sizes = [8, 32], strides = [1, 1]} : vector<8x128xf32> to vector<8x32xf32>
    %201 = arith.mulf %198, %162 : vector<8x32xf32>
    %202 = arith.mulf %197, %199 : vector<8x32xf32>
    %203 = arith.addf %201, %202 : vector<8x32xf32>
    %204 = math.tanh %203 : vector<8x32xf32>
    %205 = arith.mulf %200, %204 : vector<8x32xf32>
    %c0_71 = arith.constant 0 : index
    %c0_72 = arith.constant 0 : index
    %206 = vector.load %arg4[%c0_71, %c0_72] : memref<32x128xf32, #tpu.memory_space<vmem>>, vector<32x128xf32>
    %cst_73 = arith.constant dense<0.000000e+00> : vector<8x128xf32>
    %207 = tpu.matmul %205, %206, %cst_73 {dimension_numbers = #tpu.dot_dimension_numbers<[1], [0], [0], [1], [0, 0, 1, 1], [], []>} : vector<8x32xf32>, vector<32x128xf32>, vector<8x128xf32> -> vector<8x128xf32>
    %208 = arith.addf %207, %189 : vector<8x128xf32>
    %c0_74 = arith.constant 0 : index
    %c0_75 = arith.constant 0 : index
    %209 = vector.load %arg6[%c0_74, %c0_75] : memref<1x128xf32, #tpu.memory_space<vmem>>, vector<1x128xf32>
    %210 = vector.broadcast %209 : vector<1x128xf32> to vector<8x128xf32>
    %211 = arith.addf %208, %210 : vector<8x128xf32>
    %212 = arith.mulf %211, %15 : vector<8x128xf32>
    %213 = math.tanh %212 : vector<8x128xf32>
    %214 = arith.mulf %213, %15 : vector<8x128xf32>
    %215 = arith.addf %214, %18 : vector<8x128xf32>
    %216 = vector.extract_strided_slice %215 {offsets = [0, 0], sizes = [8, 32], strides = [1, 1]} : vector<8x128xf32> to vector<8x32xf32>
    %217 = vector.extract_strided_slice %215 {offsets = [0, 32], sizes = [8, 32], strides = [1, 1]} : vector<8x128xf32> to vector<8x32xf32>
    %218 = vector.extract_strided_slice %215 {offsets = [0, 64], sizes = [8, 32], strides = [1, 1]} : vector<8x128xf32> to vector<8x32xf32>
    %219 = vector.extract_strided_slice %215 {offsets = [0, 96], sizes = [8, 32], strides = [1, 1]} : vector<8x128xf32> to vector<8x32xf32>
    %220 = arith.mulf %217, %181 : vector<8x32xf32>
    %221 = arith.mulf %216, %218 : vector<8x32xf32>
    %222 = arith.addf %220, %221 : vector<8x32xf32>
    %223 = math.tanh %222 : vector<8x32xf32>
    %224 = arith.mulf %219, %223 : vector<8x32xf32>
    %c5_i32 = arith.constant 5 : i32
    %c8_i32_76 = arith.constant 8 : i32
    %225 = arith.muli %c5_i32, %c8_i32_76 : i32
    %226 = tpu.assume_multiple %225, 8 : i32
    %c0_77 = arith.constant 0 : index
    %c0_78 = arith.constant 0 : index
    %227 = vector.load %arg2[%c0_77, %c0_78] : memref<32x128xf32, #tpu.memory_space<vmem>>, vector<32x128xf32>
    %cst_79 = arith.constant dense<0.000000e+00> : vector<8x128xf32>
    %228 = tpu.matmul %205, %227, %cst_79 {dimension_numbers = #tpu.dot_dimension_numbers<[1], [0], [0], [1], [0, 0, 1, 1], [], []>} : vector<8x32xf32>, vector<32x128xf32>, vector<8x128xf32> -> vector<8x128xf32>
    %c0_80 = arith.constant 0 : index
    %c0_81 = arith.constant 0 : index
    %229 = vector.load %arg5[%c0_80, %c0_81] : memref<32x128xf32, #tpu.memory_space<vmem>>, vector<32x128xf32>
    %cst_82 = arith.constant dense<0.000000e+00> : vector<8x128xf32>
    %230 = tpu.matmul %224, %229, %cst_82 {dimension_numbers = #tpu.dot_dimension_numbers<[1], [0], [0], [1], [0, 0, 1, 1], [], []>} : vector<8x32xf32>, vector<32x128xf32>, vector<8x128xf32> -> vector<8x128xf32>
    %231 = arith.index_cast %226 : i32 to index
    %c0_83 = arith.constant 0 : index
    %232 = vector.load %arg10[%231, %c0_83] : memref<64x128xf32, #tpu.memory_space<vmem>>, vector<8x128xf32>
    %233 = arith.addf %232, %228 : vector<8x128xf32>
    %234 = arith.mulf %233, %15 : vector<8x128xf32>
    %235 = math.tanh %234 : vector<8x128xf32>
    %236 = arith.mulf %235, %15 : vector<8x128xf32>
    %237 = arith.addf %236, %18 : vector<8x128xf32>
    %238 = vector.extract_strided_slice %237 {offsets = [0, 0], sizes = [8, 32], strides = [1, 1]} : vector<8x128xf32> to vector<8x32xf32>
    %239 = vector.extract_strided_slice %237 {offsets = [0, 32], sizes = [8, 32], strides = [1, 1]} : vector<8x128xf32> to vector<8x32xf32>
    %240 = vector.extract_strided_slice %237 {offsets = [0, 64], sizes = [8, 32], strides = [1, 1]} : vector<8x128xf32> to vector<8x32xf32>
    %241 = vector.extract_strided_slice %237 {offsets = [0, 96], sizes = [8, 32], strides = [1, 1]} : vector<8x128xf32> to vector<8x32xf32>
    %242 = arith.mulf %239, %203 : vector<8x32xf32>
    %243 = arith.mulf %238, %240 : vector<8x32xf32>
    %244 = arith.addf %242, %243 : vector<8x32xf32>
    %245 = math.tanh %244 : vector<8x32xf32>
    %246 = arith.mulf %241, %245 : vector<8x32xf32>
    %c0_84 = arith.constant 0 : index
    %c0_85 = arith.constant 0 : index
    %247 = vector.load %arg4[%c0_84, %c0_85] : memref<32x128xf32, #tpu.memory_space<vmem>>, vector<32x128xf32>
    %cst_86 = arith.constant dense<0.000000e+00> : vector<8x128xf32>
    %248 = tpu.matmul %246, %247, %cst_86 {dimension_numbers = #tpu.dot_dimension_numbers<[1], [0], [0], [1], [0, 0, 1, 1], [], []>} : vector<8x32xf32>, vector<32x128xf32>, vector<8x128xf32> -> vector<8x128xf32>
    %249 = arith.addf %248, %230 : vector<8x128xf32>
    %c0_87 = arith.constant 0 : index
    %c0_88 = arith.constant 0 : index
    %250 = vector.load %arg6[%c0_87, %c0_88] : memref<1x128xf32, #tpu.memory_space<vmem>>, vector<1x128xf32>
    %251 = vector.broadcast %250 : vector<1x128xf32> to vector<8x128xf32>
    %252 = arith.addf %249, %251 : vector<8x128xf32>
    %253 = arith.mulf %252, %15 : vector<8x128xf32>
    %254 = math.tanh %253 : vector<8x128xf32>
    %255 = arith.mulf %254, %15 : vector<8x128xf32>
    %256 = arith.addf %255, %18 : vector<8x128xf32>
    %257 = vector.extract_strided_slice %256 {offsets = [0, 0], sizes = [8, 32], strides = [1, 1]} : vector<8x128xf32> to vector<8x32xf32>
    %258 = vector.extract_strided_slice %256 {offsets = [0, 32], sizes = [8, 32], strides = [1, 1]} : vector<8x128xf32> to vector<8x32xf32>
    %259 = vector.extract_strided_slice %256 {offsets = [0, 64], sizes = [8, 32], strides = [1, 1]} : vector<8x128xf32> to vector<8x32xf32>
    %260 = vector.extract_strided_slice %256 {offsets = [0, 96], sizes = [8, 32], strides = [1, 1]} : vector<8x128xf32> to vector<8x32xf32>
    %261 = arith.mulf %258, %222 : vector<8x32xf32>
    %262 = arith.mulf %257, %259 : vector<8x32xf32>
    %263 = arith.addf %261, %262 : vector<8x32xf32>
    %264 = math.tanh %263 : vector<8x32xf32>
    %265 = arith.mulf %260, %264 : vector<8x32xf32>
    %c6_i32 = arith.constant 6 : i32
    %c8_i32_89 = arith.constant 8 : i32
    %266 = arith.muli %c6_i32, %c8_i32_89 : i32
    %267 = tpu.assume_multiple %266, 8 : i32
    %c0_90 = arith.constant 0 : index
    %c0_91 = arith.constant 0 : index
    %268 = vector.load %arg2[%c0_90, %c0_91] : memref<32x128xf32, #tpu.memory_space<vmem>>, vector<32x128xf32>
    %cst_92 = arith.constant dense<0.000000e+00> : vector<8x128xf32>
    %269 = tpu.matmul %246, %268, %cst_92 {dimension_numbers = #tpu.dot_dimension_numbers<[1], [0], [0], [1], [0, 0, 1, 1], [], []>} : vector<8x32xf32>, vector<32x128xf32>, vector<8x128xf32> -> vector<8x128xf32>
    %c0_93 = arith.constant 0 : index
    %c0_94 = arith.constant 0 : index
    %270 = vector.load %arg5[%c0_93, %c0_94] : memref<32x128xf32, #tpu.memory_space<vmem>>, vector<32x128xf32>
    %cst_95 = arith.constant dense<0.000000e+00> : vector<8x128xf32>
    %271 = tpu.matmul %265, %270, %cst_95 {dimension_numbers = #tpu.dot_dimension_numbers<[1], [0], [0], [1], [0, 0, 1, 1], [], []>} : vector<8x32xf32>, vector<32x128xf32>, vector<8x128xf32> -> vector<8x128xf32>
    %272 = arith.index_cast %267 : i32 to index
    %c0_96 = arith.constant 0 : index
    %273 = vector.load %arg10[%272, %c0_96] : memref<64x128xf32, #tpu.memory_space<vmem>>, vector<8x128xf32>
    %274 = arith.addf %273, %269 : vector<8x128xf32>
    %275 = arith.mulf %274, %15 : vector<8x128xf32>
    %276 = math.tanh %275 : vector<8x128xf32>
    %277 = arith.mulf %276, %15 : vector<8x128xf32>
    %278 = arith.addf %277, %18 : vector<8x128xf32>
    %279 = vector.extract_strided_slice %278 {offsets = [0, 0], sizes = [8, 32], strides = [1, 1]} : vector<8x128xf32> to vector<8x32xf32>
    %280 = vector.extract_strided_slice %278 {offsets = [0, 32], sizes = [8, 32], strides = [1, 1]} : vector<8x128xf32> to vector<8x32xf32>
    %281 = vector.extract_strided_slice %278 {offsets = [0, 64], sizes = [8, 32], strides = [1, 1]} : vector<8x128xf32> to vector<8x32xf32>
    %282 = vector.extract_strided_slice %278 {offsets = [0, 96], sizes = [8, 32], strides = [1, 1]} : vector<8x128xf32> to vector<8x32xf32>
    %283 = arith.mulf %280, %244 : vector<8x32xf32>
    %284 = arith.mulf %279, %281 : vector<8x32xf32>
    %285 = arith.addf %283, %284 : vector<8x32xf32>
    %286 = math.tanh %285 : vector<8x32xf32>
    %287 = arith.mulf %282, %286 : vector<8x32xf32>
    %c0_97 = arith.constant 0 : index
    %c0_98 = arith.constant 0 : index
    %288 = vector.load %arg4[%c0_97, %c0_98] : memref<32x128xf32, #tpu.memory_space<vmem>>, vector<32x128xf32>
    %cst_99 = arith.constant dense<0.000000e+00> : vector<8x128xf32>
    %289 = tpu.matmul %287, %288, %cst_99 {dimension_numbers = #tpu.dot_dimension_numbers<[1], [0], [0], [1], [0, 0, 1, 1], [], []>} : vector<8x32xf32>, vector<32x128xf32>, vector<8x128xf32> -> vector<8x128xf32>
    %290 = arith.addf %289, %271 : vector<8x128xf32>
    %c0_100 = arith.constant 0 : index
    %c0_101 = arith.constant 0 : index
    %291 = vector.load %arg6[%c0_100, %c0_101] : memref<1x128xf32, #tpu.memory_space<vmem>>, vector<1x128xf32>
    %292 = vector.broadcast %291 : vector<1x128xf32> to vector<8x128xf32>
    %293 = arith.addf %290, %292 : vector<8x128xf32>
    %294 = arith.mulf %293, %15 : vector<8x128xf32>
    %295 = math.tanh %294 : vector<8x128xf32>
    %296 = arith.mulf %295, %15 : vector<8x128xf32>
    %297 = arith.addf %296, %18 : vector<8x128xf32>
    %298 = vector.extract_strided_slice %297 {offsets = [0, 0], sizes = [8, 32], strides = [1, 1]} : vector<8x128xf32> to vector<8x32xf32>
    %299 = vector.extract_strided_slice %297 {offsets = [0, 32], sizes = [8, 32], strides = [1, 1]} : vector<8x128xf32> to vector<8x32xf32>
    %300 = vector.extract_strided_slice %297 {offsets = [0, 64], sizes = [8, 32], strides = [1, 1]} : vector<8x128xf32> to vector<8x32xf32>
    %301 = vector.extract_strided_slice %297 {offsets = [0, 96], sizes = [8, 32], strides = [1, 1]} : vector<8x128xf32> to vector<8x32xf32>
    %302 = arith.mulf %299, %263 : vector<8x32xf32>
    %303 = arith.mulf %298, %300 : vector<8x32xf32>
    %304 = arith.addf %302, %303 : vector<8x32xf32>
    %305 = math.tanh %304 : vector<8x32xf32>
    %306 = arith.mulf %301, %305 : vector<8x32xf32>
    %c7_i32 = arith.constant 7 : i32
    %c8_i32_102 = arith.constant 8 : i32
    %307 = arith.muli %c7_i32, %c8_i32_102 : i32
    %308 = tpu.assume_multiple %307, 8 : i32
    %c0_103 = arith.constant 0 : index
    %c0_104 = arith.constant 0 : index
    %309 = vector.load %arg2[%c0_103, %c0_104] : memref<32x128xf32, #tpu.memory_space<vmem>>, vector<32x128xf32>
    %cst_105 = arith.constant dense<0.000000e+00> : vector<8x128xf32>
    %310 = tpu.matmul %287, %309, %cst_105 {dimension_numbers = #tpu.dot_dimension_numbers<[1], [0], [0], [1], [0, 0, 1, 1], [], []>} : vector<8x32xf32>, vector<32x128xf32>, vector<8x128xf32> -> vector<8x128xf32>
    %c0_106 = arith.constant 0 : index
    %c0_107 = arith.constant 0 : index
    %311 = vector.load %arg5[%c0_106, %c0_107] : memref<32x128xf32, #tpu.memory_space<vmem>>, vector<32x128xf32>
    %cst_108 = arith.constant dense<0.000000e+00> : vector<8x128xf32>
    %312 = tpu.matmul %306, %311, %cst_108 {dimension_numbers = #tpu.dot_dimension_numbers<[1], [0], [0], [1], [0, 0, 1, 1], [], []>} : vector<8x32xf32>, vector<32x128xf32>, vector<8x128xf32> -> vector<8x128xf32>
    %313 = arith.index_cast %308 : i32 to index
    %c0_109 = arith.constant 0 : index
    %314 = vector.load %arg10[%313, %c0_109] : memref<64x128xf32, #tpu.memory_space<vmem>>, vector<8x128xf32>
    %315 = arith.addf %314, %310 : vector<8x128xf32>
    %316 = arith.mulf %315, %15 : vector<8x128xf32>
    %317 = math.tanh %316 : vector<8x128xf32>
    %318 = arith.mulf %317, %15 : vector<8x128xf32>
    %319 = arith.addf %318, %18 : vector<8x128xf32>
    %320 = vector.extract_strided_slice %319 {offsets = [0, 0], sizes = [8, 32], strides = [1, 1]} : vector<8x128xf32> to vector<8x32xf32>
    %321 = vector.extract_strided_slice %319 {offsets = [0, 32], sizes = [8, 32], strides = [1, 1]} : vector<8x128xf32> to vector<8x32xf32>
    %322 = vector.extract_strided_slice %319 {offsets = [0, 64], sizes = [8, 32], strides = [1, 1]} : vector<8x128xf32> to vector<8x32xf32>
    %323 = vector.extract_strided_slice %319 {offsets = [0, 96], sizes = [8, 32], strides = [1, 1]} : vector<8x128xf32> to vector<8x32xf32>
    %324 = arith.mulf %321, %285 : vector<8x32xf32>
    %325 = arith.mulf %320, %322 : vector<8x32xf32>
    %326 = arith.addf %324, %325 : vector<8x32xf32>
    %327 = math.tanh %326 : vector<8x32xf32>
    %328 = arith.mulf %323, %327 : vector<8x32xf32>
    %c0_110 = arith.constant 0 : index
    %c0_111 = arith.constant 0 : index
    %329 = vector.load %arg4[%c0_110, %c0_111] : memref<32x128xf32, #tpu.memory_space<vmem>>, vector<32x128xf32>
    %cst_112 = arith.constant dense<0.000000e+00> : vector<8x128xf32>
    %330 = tpu.matmul %328, %329, %cst_112 {dimension_numbers = #tpu.dot_dimension_numbers<[1], [0], [0], [1], [0, 0, 1, 1], [], []>} : vector<8x32xf32>, vector<32x128xf32>, vector<8x128xf32> -> vector<8x128xf32>
    %331 = arith.addf %330, %312 : vector<8x128xf32>
    %c0_113 = arith.constant 0 : index
    %c0_114 = arith.constant 0 : index
    %332 = vector.load %arg6[%c0_113, %c0_114] : memref<1x128xf32, #tpu.memory_space<vmem>>, vector<1x128xf32>
    %333 = vector.broadcast %332 : vector<1x128xf32> to vector<8x128xf32>
    %334 = arith.addf %331, %333 : vector<8x128xf32>
    %335 = arith.mulf %334, %15 : vector<8x128xf32>
    %336 = math.tanh %335 : vector<8x128xf32>
    %337 = arith.mulf %336, %15 : vector<8x128xf32>
    %338 = arith.addf %337, %18 : vector<8x128xf32>
    %339 = vector.extract_strided_slice %338 {offsets = [0, 0], sizes = [8, 32], strides = [1, 1]} : vector<8x128xf32> to vector<8x32xf32>
    %340 = vector.extract_strided_slice %338 {offsets = [0, 32], sizes = [8, 32], strides = [1, 1]} : vector<8x128xf32> to vector<8x32xf32>
    %341 = vector.extract_strided_slice %338 {offsets = [0, 64], sizes = [8, 32], strides = [1, 1]} : vector<8x128xf32> to vector<8x32xf32>
    %342 = vector.extract_strided_slice %338 {offsets = [0, 96], sizes = [8, 32], strides = [1, 1]} : vector<8x128xf32> to vector<8x32xf32>
    %343 = arith.mulf %340, %304 : vector<8x32xf32>
    %344 = arith.mulf %339, %341 : vector<8x32xf32>
    %345 = arith.addf %343, %344 : vector<8x32xf32>
    %346 = math.tanh %345 : vector<8x32xf32>
    %347 = arith.mulf %342, %346 : vector<8x32xf32>
    %c8_i32_115 = arith.constant 8 : i32
    %c0_116 = arith.constant 0 : index
    %c0_117 = arith.constant 0 : index
    %348 = vector.load %arg7[%c0_116, %c0_117] : memref<1x32xf32, #tpu.memory_space<vmem>>, vector<1x32xf32>
    %349 = vector.broadcast %348 : vector<1x32xf32> to vector<8x32xf32>
    %350 = arith.mulf %347, %349 : vector<8x32xf32>
    %cst_118 = arith.constant dense<0.000000e+00> : vector<8xf32>
    %351 = vector.multi_reduction <add>, %350, %cst_118 [1] : vector<8x32xf32> to vector<8xf32>
    %352 = vector.shape_cast %351 : vector<8xf32> to vector<8x1xf32>
    %c0_119 = arith.constant 0 : index
    %c0_120 = arith.constant 0 : index
    %353 = vector.load %arg8[%c0_119, %c0_120] : memref<1x1xf32, #tpu.memory_space<vmem>>, vector<1x1xf32>
    %354 = vector.broadcast %353 : vector<1x1xf32> to vector<8x1xf32>
    %355 = arith.addf %352, %354 : vector<8x1xf32>
    %c0_121 = arith.constant 0 : index
    %c0_122 = arith.constant 0 : index
    %356 = vector.load %arg9[%c0_121, %c0_122] : memref<8x1xf32, #tpu.memory_space<vmem>>, vector<8x1xf32>
    tpu.vector_store %arg9[%c0_121, %c0_122], %355 {strides = array<i32>} : memref<8x1xf32, #tpu.memory_space<vmem>>, vector<8x1xf32>,
    return
  }
}

</mosaic_0001>

<bundles_post_ra>
// kernel: tpu_custom_call.1
= control target key start
LH: loop header
LB: loop body
LE: loop exit
PB: predicated region body
PF: predicated region fallthrough
CT: control target
= control target key end

     0   :  { %s1670_s0 = inlined_call_operand.vmem [shape: f32[64,16], index: 0, kind: input, shape index: {}]   ;;  %s1671_s1 = inlined_call_operand.vmem [shape: f32[16,128], index: 1, kind: input, shape index: {}]   ;;  %s1672_s2 = inlined_call_operand.vmem [shape: f32[32,128], index: 2, kind: input, shape index: {}]   ;;  %s1673_s3 = inlined_call_operand.vmem [shape: f32[1,128], index: 3, kind: input, shape index: {}]   ;;  %s1674_s4 = inlined_call_operand.vmem [shape: f32[32,128], index: 4, kind: input, shape index: {}]   ;;  %s1675_s5 = inlined_call_operand.hbm [shape: f32[32,128], index: 5, kind: input, shape index: {}]   ;;  %s1676_s6 = inlined_call_operand.vmem [shape: f32[1,128], index: 6, kind: input, shape index: {}]   ;;  %s1677_s7 = inlined_call_operand.vmem [shape: f32[1,32], index: 7, kind: input, shape index: {}]   ;;  %s1678_s8 = inlined_call_operand.<no memory space> [shape: f32[1,1], index: 8, kind: input, shape index: {}]   ;;  %s1679_s9 = inlined_call_operand.vmem [shape: f32[8,1], index: 9, kind: output, shape index: {}]  }
   0x1   :  { %v14_v0 = vstv %s1678_s8 }
   0x2   :  { %15 = vst [vmem:[#allocation3] sm:$0x1] %v14_v0 }
   0x3   :  { %16 = vsyncpa [#allocation5], 0  ;;  %s31_s13 = sshll.u32 %s1675_s5, 4  ;;  %s1245_s14 = smov [#allocation4]   ;;  %s32_s13 = int_to_ptr.hbm [resolvable:$true] %s31_s13 }
   0x4   :  { %s33_s15 = sshll.u32 %s1245_s14, 4  ;;  %s1246_s16 = smov 128   ;;  %s34_s15 = int_to_ptr.vmem [resolvable:$true] %s33_s15 }
   0x5   :  { %s1247_s17 = smov 8  }
   0x6   :  { %39 = dma.hbm_to_vmem [thread:$0]  %s32_s13, 512, %s34_s15, [#allocation5], %s1246_s16, %s1246_s16, %s1247_s17  }
   0x7   :  { %1243 = dma.done.wait [#allocation5], 512  }
   0x8   :  { %1244 = vsyncadd [#allocation5], 4294966784  ;;  %v1312_v1 = vld [vmem:[%s1672_s2 + $0x18] sm:$0xff]  ;;  %v59_v2 = vld [vmem:[%s1671_s1 + $0x8] sm:$0xff]  ;;  %vm64_vm0 = vcmask 130048   ;;  %v1248_v8 = vmov 0.0   ;;  %v138_v9 = vlaneseq }
   0x9   :  { %v1320_v3 = vld [vmem:[%s1672_s2 + $0x10] sm:$0xff]  ;;  %165 = vmatpush.msra.mxu1 %v1312_v1  ;;  %103 = vmatpush.msra.mxu0 %v59_v2  ;;  %v58_v4 = vld [vmem:[%s1671_s1] sm:$0xff]  ;;  %v1332_v6 = vld [vmem:[%s1672_s2 + $0x8] sm:$0xff]  ;;  %v1249_v14 = vmov 0.5   ;;  %s1251_s30 = smov 32   ;;  %vm149_vm4 = vcmask 261120  }
   0xa   :  { %v50_v5 = vld [vmem:[%s1670_s0] sm:$0xff]  ;;  %v139_v10 = vand.u32 127, %v138_v9  ;;  %v1375_v30 = vld [vmem:[%s1674_s4 + $0x18] sm:$0xff]  ;;  %v1384_v32 = vld [vmem:[%s1674_s4 + $0x10] sm:$0xff]  ;;  %vm1106_vm5 = vcmask 7168  }
   0xb   :  { %166 = vmatpush.msra.mxu1 %v1320_v3  ;;  %104 = vmatpush.msra.mxu0 %v58_v4  ;;  %v1339_v7 = vld [vmem:[%s1672_s2] sm:$0xff]  ;;  %v1377_v31 = vld [vmem:[#allocation4 + $0x10] sm:$0xff]  ;;  %v1386_v33 = vld [vmem:[#allocation4 + $0x8] sm:$0xff]  ;;  %s1252_s2 = smov 96  }
   0xc   :  { %1113 = vmatmul.msk.f32.vlgmr.msra.gmra.mxu0 %vm64_vm0, %v50_v5  ;;  %v1354_v11 = vld [vmem:[%s1673_s3] ss:$0 sm:$0xff]  ;;  %vm140_vm1 = vcmp.ge.s32.totalorder %v139_v10, 64  ;;  %vm141_vm2 = vcmp.lt.s32.totalorder %v139_v10, 96  ;;  %s1250_s3 = smov 64   ;;  %241 = vmatpush.msra.mxu3 %v1375_v30  ;;  %v1391_v34 = vld [vmem:[%s1674_s4 + $0x8] sm:$0xff] }
   0xd   :  { %167 = vmatpush.msra.mxu1 %v1332_v6  ;;  %vm142_vm3 = vmand %vm140_vm1, %vm141_vm2  ;;  %v1370_v29 = vld [vmem:[#allocation4 + $0x18] sm:$0xff]  ;;  %v51_v35 = vld [vmem:[%s1670_s0 + $0x8] sm:$0xff] }
   0xe   :  { %v1357_v15 = vsel %vm142_vm3, 1.0, %v1249_v14  ;;  %v1360_v20 = vsel %vm142_vm3, 0.0, %v1249_v14  ;;  %189 = vmatpush.msra.mxu2 %v1370_v29  ;;  %242 = vmatpush.msra.mxu3 %v1384_v32  ;;  %v1399_v36 = vld [vmem:[#allocation4] sm:$0xff]  ;;  %v1437_v44 = vld [vmem:[%s1676_s6] ss:$0 sm:$0xff] }
   0xf   :  { %168 = vmatpush.msra.mxu1 %v1339_v7  ;;  %v1404_v37 = vld [vmem:[%s1674_s4] sm:$0xff] }
  0x10   :  { %169 = vmatmul.f32.vlgmr.msra.gmra.mxu1 %v1248_v8  ;;  %190 = vmatpush.msra.mxu2 %v1377_v31 }
  0x11   :  { %287 = vmatpush.msrb.mxu1 %v1312_v1  ;;  %243 = vmatpush.msra.mxu3 %v1391_v34 }
  0x12   :  { %191 = vmatpush.msra.mxu2 %v1386_v33 }
  0x13   :  { %288 = vmatpush.msrb.mxu1 %v1320_v3  ;;  %244 = vmatpush.msra.mxu3 %v1404_v37 }
  0x14   :  { %1114 = vmatmul.msk.f32.gmra.mxu0 %vm64_vm0, %v51_v35  ;;  %192 = vmatpush.msra.mxu2 %v1399_v36 }
  0x15   :  { %289 = vmatpush.msrb.mxu1 %v1332_v6  ;;  %193 = vmatmul.f32.vlgmr.msra.gmra.mxu2 %v1248_v8 }
  0x16   :  { %361 = vmatpush.msrb.mxu3 %v1375_v30  ;;  %312 = vmatpush.msrb.mxu2 %v1370_v29 }
  0x17   :  { %290 = vmatpush.msrb.mxu1 %v1339_v7 }
  0x18   :  { %362 = vmatpush.msrb.mxu3 %v1384_v32  ;;  %313 = vmatpush.msrb.mxu2 %v1377_v31 }
  0x19   :  { %403 = vmatpush.msra.mxu1 %v1312_v1 }
  0x1a   :  { %363 = vmatpush.msrb.mxu3 %v1391_v34  ;;  %314 = vmatpush.msrb.mxu2 %v1386_v33 }
  0x1b   :  { %404 = vmatpush.msra.mxu1 %v1320_v3 }
  0x1c   :  { %364 = vmatpush.msrb.mxu3 %v1404_v37  ;;  %315 = vmatpush.msrb.mxu2 %v1399_v36 }
  0x1d   :  { %405 = vmatpush.msra.mxu1 %v1332_v6 }
  0x1e   :  { %428 = vmatpush.msra.mxu2 %v1370_v29 }
  0x1f   :  { %406 = vmatpush.msra.mxu1 %v1339_v7 }
  0x20   :  { %429 = vmatpush.msra.mxu2 %v1377_v31 }
  0x22   :  { %430 = vmatpush.msra.mxu2 %v1386_v33 }
  0x24   :  { %431 = vmatpush.msra.mxu2 %v1399_v36 }
  0x89   :  { %v106_v12 = vpop.f32.mrf.mxu0 }
  0x8a   :  { %v107_v13 = vadd.f32 %v1354_v11, %v106_v12 }
  0x8d   :  { %v170_v16 = vpop.f32.mrf.mxu1 }
  0x8e   :  { %v198_v17 = vadd.f32 %v170_v16, %v107_v13  ;;  %v52_v16 = vld [vmem:[%s1670_s0 + $0x10] sm:$0xff] }
  0x8f   :  { %1115 = vmatmul.msk.f32.gmra.mxu0 %vm64_vm0, %v52_v16 }
  0x90   :  { %v199_v18 = vmul.f32 %v198_v17, %v1357_v15 }
  0x91   :  { %v109_v41 = vpop.f32.mrf.mxu0 }
  0x92   :  { %1155 = vtanh.f32 %v199_v18  ;;  %v110_v43 = vadd.f32 %v1354_v11, %v109_v41 }
  0x98   :  { %v1156_v19 = vpop.eup %1155  ;;  %v194_v42 = vpop.f32.mrf.mxu2 }
  0x99   :  { %v201_v21 = vmul.f32 %v1156_v19, %v1357_v15 }
  0x9b   :  { %v202_v22 = vadd.f32 %v201_v21, %v1360_v20 }
  0x9d   :  { %205 = vrot.lane.b32.xlu0 %v202_v22, %s1250_s3  ;;  %v203_v25 = vmul.f32 0.0, %v202_v22 }
 0x10c   :  { %v112_v19 = vpop.f32.mrf.mxu0 }
 0x10d   :  { %v113_v21 = vadd.f32 %v1354_v11, %v112_v19 }
 0x10f   :  { %v206_v23 = vpop.permute.xlu0 %205 }
 0x110   :  { %v208_v24 = vmul.f32 %v206_v23, %v202_v22 }
 0x112   :  { %210 = vrot.lane.b32.xlu0 %v208_v24, %s1251_s30 }
 0x184   :  { %v211_v26 = vpop.permute.xlu0 %210 }
 0x185   :  { %v1366_v27 = vadd.f32 %v211_v26, %v203_v25 }
 0x187   :  { %1157 = vtanh.f32 %v1366_v27 }
 0x18d   :  { %v1158_v28 = vpop.eup %1157 }
 0x18e   :  { %216 = vrot.lane.b32.xlu1 %v1158_v28, %s1250_s3 }
 0x200   :  { %v217_v38 = vpop.permute.xlu1 %216 }
 0x201   :  { %v219_v39 = vmul.f32 %v217_v38, %v202_v22 }
 0x203   :  { %225 = vrot.lane.b32.xlu1 %v219_v39, %s1251_s30 }
 0x275   :  { %v226_v40 = vpop.permute.xlu1 %225 }
 0x276   :  { %1121 = vmatmul.msk.f32.vlgmr.msra.gmra.mxu3 %vm149_vm4, %v226_v40  ;;  %1122 = vmatmul.msk.f32.vlgmr.msrb.gmra.mxu1 %vm149_vm4, %v226_v40 }
 0x277   :  { %519 = vmatpush.msrb.mxu1 %v1312_v1  ;;  %477 = vmatpush.msra.mxu3 %v1375_v30 }
 0x279   :  { %520 = vmatpush.msrb.mxu1 %v1320_v3  ;;  %478 = vmatpush.msra.mxu3 %v1384_v32 }
 0x27b   :  { %521 = vmatpush.msrb.mxu1 %v1332_v6  ;;  %479 = vmatpush.msra.mxu3 %v1391_v34 }
 0x27d   :  { %522 = vmatpush.msrb.mxu1 %v1339_v7  ;;  %480 = vmatpush.msra.mxu3 %v1404_v37 }
 0x2f3   :  { %v292_v45 = vpop.f32.mrf.mxu1 }
 0x2f4   :  { %v322_v48 = vadd.f32 %v292_v45, %v110_v43 }
 0x2f6   :  { %v323_v51 = vmul.f32 %v322_v48, %v1357_v15 }
 0x2f9   :  { %v246_v46 = vpop.f32.mrf.mxu3 }
 0x2fa   :  { %v247_v47 = vadd.f32 %v246_v46, %v194_v42 }
 0x2fc   :  { %v253_v49 = vadd.f32 %v1437_v44, %v247_v47 }
 0x2fe   :  { %v254_v50 = vmul.f32 %v253_v49, %v1357_v15 }
 0x300   :  { %1159 = vtanh.f32 %v254_v50 }
 0x301   :  { %1161 = vtanh.f32 %v323_v51 }
 0x306   :  { %v1160_v52 = vpop.eup %1159 }
 0x307   :  { %v256_v53 = vmul.f32 %v1160_v52, %v1357_v15  ;;  %v1162_v55 = vpop.eup %1161 }
 0x308   :  { %v325_v56 = vmul.f32 %v1162_v55, %v1357_v15 }
 0x309   :  { %v257_v54 = vadd.f32 %v256_v53, %v1360_v20 }
 0x30a   :  { %v326_v57 = vadd.f32 %v325_v56, %v1360_v20 }
 0x30b   :  { %260 = vrot.lane.b32.xlu2 %v257_v54, %s1250_s3  ;;  %v258_v62 = vmul.f32 0.0, %v257_v54 }
 0x30c   :  { %v327_v2 = vmul.f32 %v326_v57, %v1366_v27 }
 0x313   :  { %329 = vrot.lane.b32.xlu2 %v326_v57, %s1250_s3 }
 0x365   :  { %v261_v58 = vpop.permute.xlu2 %260 }
 0x366   :  { %v263_v59 = vmul.f32 %v261_v58, %v257_v54 }
 0x368   :  { %265 = vrot.lane.b32.xlu0 %v263_v59, %s1251_s30 }
 0x36d   :  { %v330_v60 = vpop.permute.xlu2 %329 }
 0x36e   :  { %v332_v61 = vmul.f32 %v330_v60, %v326_v57 }
 0x370   :  { %334 = vrot.lane.b32.xlu1 %v332_v61, %s1251_s30 }
 0x3da   :  { %v266_v63 = vpop.permute.xlu0 %265 }
 0x3db   :  { %v268_v0 = vadd.f32 %v266_v63, %v258_v62 }
 0x3dd   :  { %1163 = vtanh.f32 %v268_v0 }
 0x3e2   :  { %v335_v4 = vpop.permute.xlu1 %334 }
 0x3e3   :  { %v1164_v5 = vpop.eup %1163  ;;  %v337_v8 = vadd.f32 %v335_v4, %v327_v2 }
 0x3e4   :  { %271 = vrot.lane.b32.xlu2 %v1164_v5, %s1250_s3 }
 0x3e5   :  { %1165 = vtanh.f32 %v337_v8 }
 0x3eb   :  { %v1166_v9 = vpop.eup %1165 }
 0x3ec   :  { %340 = vrot.lane.b32.xlu0 %v1166_v9, %s1250_s3 }
 0x43e   :  { %v272_v10 = vpop.permute.xlu2 %271 }
 0x43f   :  { %v274_v12 = vmul.f32 %v272_v10, %v257_v54 }
 0x441   :  { %296 = vrot.lane.b32.xlu1 %v274_v12, %s1251_s30 }
 0x45e   :  { %v341_v13 = vpop.permute.xlu0 %340 }
 0x45f   :  { %v343_v14 = vmul.f32 %v341_v13, %v326_v57  ;;  %v53_v57 = vld [vmem:[%s1670_s0 + $0x18] sm:$0xff] }
 0x460   :  { %1116 = vmatmul.msk.f32.gmra.mxu0 %vm64_vm0, %v53_v57 }
 0x461   :  { %345 = vrot.lane.b32.xlu2 %v343_v14, %s1251_s30 }
 0x4b3   :  { %v297_v17 = vpop.permute.xlu1 %296 }
 0x4b4   :  { %1123 = vmatmul.msk.f32.vlgmr.msrb.gmra.mxu2 %vm149_vm4, %v297_v17 }
 0x4b5   :  { %544 = vmatpush.msrb.mxu2 %v1370_v29 }
 0x4b7   :  { %545 = vmatpush.msrb.mxu2 %v1377_v31 }
 0x4b9   :  { %546 = vmatpush.msrb.mxu2 %v1386_v33 }
 0x4bb   :  { %v346_v18 = vpop.permute.xlu2 %345  ;;  %547 = vmatpush.msrb.mxu2 %v1399_v36 }
 0x4bc   :  { %1124 = vmatmul.msk.f32.vlgmr.msrb.gmra.mxu3 %vm149_vm4, %v346_v18  ;;  %1125 = vmatmul.msk.f32.vlgmr.msra.gmra.mxu1 %vm149_vm4, %v346_v18 }
 0x4bd   :  { %593 = vmatpush.msrb.mxu3 %v1375_v30  ;;  %635 = vmatpush.msra.mxu1 %v1312_v1 }
 0x4bf   :  { %594 = vmatpush.msrb.mxu3 %v1384_v32  ;;  %636 = vmatpush.msra.mxu1 %v1320_v3 }
 0x4c1   :  { %595 = vmatpush.msrb.mxu3 %v1391_v34  ;;  %637 = vmatpush.msra.mxu1 %v1332_v6 }
 0x4c3   :  { %596 = vmatpush.msrb.mxu3 %v1404_v37  ;;  %638 = vmatpush.msra.mxu1 %v1339_v7 }
 0x537   :  { %v317_v25 = vpop.f32.mrf.mxu2 }
 0x539   :  { %v408_v22 = vpop.f32.mrf.mxu1 }
 0x53a   :  { %v438_v23 = vadd.f32 %v408_v22, %v113_v21 }
 0x53c   :  { %v439_v24 = vmul.f32 %v438_v23, %v1357_v15 }
 0x53e   :  { %1167 = vtanh.f32 %v439_v24 }
 0x53f   :  { %v366_v26 = vpop.f32.mrf.mxu3 }
 0x540   :  { %v367_v27 = vadd.f32 %v366_v26, %v317_v25 }
 0x542   :  { %v369_v28 = vadd.f32 %v1437_v44, %v367_v27 }
 0x544   :  { %v1168_v35 = vpop.eup %1167  ;;  %v370_v38 = vmul.f32 %v369_v28, %v1357_v15 }
 0x545   :  { %v441_v39 = vmul.f32 %v1168_v35, %v1357_v15 }
 0x546   :  { %1169 = vtanh.f32 %v370_v38 }
 0x547   :  { %v442_v40 = vadd.f32 %v441_v39, %v1360_v20 }
 0x549   :  { %445 = vrot.lane.b32.xlu1 %v442_v40, %s1250_s3  ;;  %v443_v53 = vmul.f32 %v442_v40, %v337_v8 }
 0x54c   :  { %v1170_v41 = vpop.eup %1169 }
 0x54d   :  { %v372_v42 = vmul.f32 %v1170_v41, %v1357_v15 }
 0x54f   :  { %v373_v43 = vadd.f32 %v372_v42, %v1360_v20 }
 0x551   :  { %376 = vrot.lane.b32.xlu0 %v373_v43, %s1250_s3  ;;  %v374_v49 = vmul.f32 %v373_v43, %v268_v0  ;;  %v115_v0 = vpop.f32.mrf.mxu0 }
 0x552   :  { %v116_v2 = vadd.f32 %v1354_v11, %v115_v0 }
 0x5bb   :  { %v446_v45 = vpop.permute.xlu1 %445 }
 0x5bc   :  { %v448_v46 = vmul.f32 %v446_v45, %v442_v40 }
 0x5be   :  { %450 = vrot.lane.b32.xlu0 %v448_v46, %s1251_s30 }
 0x5c3   :  { %v377_v47 = vpop.permute.xlu0 %376 }
 0x5c4   :  { %v379_v48 = vmul.f32 %v377_v47, %v373_v43 }
 0x5c6   :  { %381 = vrot.lane.b32.xlu2 %v379_v48, %s1251_s30  ;;  %v54_v48 = vld [vmem:[%s1670_s0 + $0x20] sm:$0xff] }
 0x5c7   :  { %1117 = vmatmul.msk.f32.gmra.mxu0 %vm64_vm0, %v54_v48 }
 0x620   :  { %v382_v50 = vpop.permute.xlu2 %381 }
 0x621   :  { %v1486_v51 = vadd.f32 %v382_v50, %v374_v49 }
 0x623   :  { %1171 = vtanh.f32 %v1486_v51 }
 0x629   :  { %v1172_v52 = vpop.eup %1171 }
 0x62a   :  { %387 = vrot.lane.b32.xlu1 %v1172_v52, %s1250_s3 }
 0x630   :  { %v451_v54 = vpop.permute.xlu0 %450 }
 0x631   :  { %v453_v55 = vadd.f32 %v451_v54, %v443_v53 }
 0x633   :  { %1173 = vtanh.f32 %v453_v55 }
 0x639   :  { %v1174_v56 = vpop.eup %1173 }
 0x63a   :  { %456 = vrot.lane.b32.xlu2 %v1174_v56, %s1250_s3 }
 0x694   :  { %v457_v58 = vpop.permute.xlu2 %456 }
 0x695   :  { %v459_v59 = vmul.f32 %v457_v58, %v442_v40 }
 0x697   :  { %461 = vrot.lane.b32.xlu1 %v459_v59, %s1251_s30 }
 0x69c   :  { %v388_v60 = vpop.permute.xlu1 %387 }
 0x69d   :  { %v390_v61 = vmul.f32 %v388_v60, %v373_v43 }
 0x69f   :  { %412 = vrot.lane.b32.xlu0 %v390_v61, %s1251_s30 }
 0x709   :  { %v462_v62 = vpop.permute.xlu1 %461 }
 0x70a   :  { %1127 = vmatmul.msk.f32.vlgmr.msra.gmra.mxu3 %vm149_vm4, %v462_v62  ;;  %1128 = vmatmul.msk.f32.vlgmr.msrb.gmra.mxu1 %vm149_vm4, %v462_v62 }
 0x70b   :  { %709 = vmatpush.msra.mxu3 %v1375_v30  ;;  %751 = vmatpush.msrb.mxu1 %v1312_v1 }
 0x70d   :  { %710 = vmatpush.msra.mxu3 %v1384_v32  ;;  %752 = vmatpush.msrb.mxu1 %v1320_v3 }
 0x70f   :  { %711 = vmatpush.msra.mxu3 %v1391_v34  ;;  %753 = vmatpush.msrb.mxu1 %v1332_v6 }
 0x711   :  { %v413_v63 = vpop.permute.xlu0 %412  ;;  %712 = vmatpush.msra.mxu3 %v1404_v37  ;;  %754 = vmatpush.msrb.mxu1 %v1339_v7 }
 0x712   :  { %1126 = vmatmul.msk.f32.vlgmr.msra.gmra.mxu2 %vm149_vm4, %v413_v63 }
 0x713   :  { %660 = vmatpush.msra.mxu2 %v1370_v29 }
 0x715   :  { %661 = vmatpush.msra.mxu2 %v1377_v31 }
 0x717   :  { %662 = vmatpush.msra.mxu2 %v1386_v33 }
 0x719   :  { %663 = vmatpush.msra.mxu2 %v1399_v36 }
 0x787   :  { %v524_v4 = vpop.f32.mrf.mxu1 }
 0x788   :  { %v554_v5 = vadd.f32 %v524_v4, %v116_v2 }
 0x78a   :  { %v555_v8 = vmul.f32 %v554_v5, %v1357_v15 }
 0x78c   :  { %1175 = vtanh.f32 %v555_v8 }
 0x78d   :  { %v482_v12 = vpop.f32.mrf.mxu3 }
 0x792   :  { %v1176_v9 = vpop.eup %1175 }
 0x793   :  { %v557_v10 = vmul.f32 %v1176_v9, %v1357_v15 }
 0x795   :  { %v433_v13 = vpop.f32.mrf.mxu2  ;;  %v558_v14 = vadd.f32 %v557_v10, %v1360_v20 }
 0x796   :  { %v483_v16 = vadd.f32 %v482_v12, %v433_v13 }
 0x797   :  { %561 = vrot.lane.b32.xlu0 %v558_v14, %s1250_s3  ;;  %v559_v27 = vmul.f32 %v558_v14, %v453_v55 }
 0x798   :  { %v485_v17 = vadd.f32 %v1437_v44, %v483_v16 }
 0x79a   :  { %v486_v18 = vmul.f32 %v485_v17, %v1357_v15 }
 0x79c   :  { %1177 = vtanh.f32 %v486_v18 }
 0x7a2   :  { %v1178_v19 = vpop.eup %1177 }
 0x7a3   :  { %v488_v21 = vmul.f32 %v1178_v19, %v1357_v15 }
 0x7a5   :  { %v489_v22 = vadd.f32 %v488_v21, %v1360_v20 }
 0x7a7   :  { %492 = vrot.lane.b32.xlu2 %v489_v22, %s1250_s3  ;;  %v490_v39 = vmul.f32 %v489_v22, %v1486_v51  ;;  %v118_v51 = vpop.f32.mrf.mxu0 }
 0x7a8   :  { %v119_v52 = vadd.f32 %v1354_v11, %v118_v51 }
 0x801   :  { %v493_v23 = vpop.permute.xlu2 %492 }
 0x802   :  { %v495_v24 = vmul.f32 %v493_v23, %v489_v22 }
 0x804   :  { %497 = vrot.lane.b32.xlu1 %v495_v24, %s1251_s30 }
 0x809   :  { %v562_v25 = vpop.permute.xlu0 %561 }
 0x80a   :  { %v564_v26 = vmul.f32 %v562_v25, %v558_v14 }
 0x80c   :  { %566 = vrot.lane.b32.xlu2 %v564_v26, %s1251_s30 }
 0x866   :  { %v567_v28 = vpop.permute.xlu2 %566 }
 0x867   :  { %v569_v35 = vadd.f32 %v567_v28, %v559_v27 }
 0x869   :  { %1179 = vtanh.f32 %v569_v35 }
 0x86f   :  { %v1180_v38 = vpop.eup %1179 }
 0x870   :  { %572 = vrot.lane.b32.xlu1 %v1180_v38, %s1250_s3 }
 0x876   :  { %v498_v40 = vpop.permute.xlu1 %497 }
 0x877   :  { %v500_v41 = vadd.f32 %v498_v40, %v490_v39 }
 0x879   :  { %1181 = vtanh.f32 %v500_v41 }
 0x87f   :  { %v1182_v42 = vpop.eup %1181 }
 0x880   :  { %503 = vrot.lane.b32.xlu0 %v1182_v42, %s1250_s3 }
 0x8e2   :  { %v573_v43 = vpop.permute.xlu1 %572 }
 0x8e3   :  { %v575_v45 = vmul.f32 %v573_v43, %v558_v14 }
 0x8e5   :  { %577 = vrot.lane.b32.xlu0 %v575_v45, %s1251_s30 }
 0x8f2   :  { %v504_v46 = vpop.permute.xlu0 %503 }
 0x8f3   :  { %v506_v47 = vmul.f32 %v504_v46, %v489_v22  ;;  %v55_v22 = vld [vmem:[%s1670_s0 + $0x28] sm:$0xff] }
 0x8f4   :  { %1118 = vmatmul.msk.f32.gmra.mxu0 %vm64_vm0, %v55_v22 }
 0x8f5   :  { %528 = vrot.lane.b32.xlu2 %v506_v47, %s1251_s30 }
 0x94f   :  { %v529_v49 = vpop.permute.xlu2 %528 }
 0x950   :  { %1129 = vmatmul.msk.f32.vlgmr.msrb.gmra.mxu2 %vm149_vm4, %v529_v49 }
 0x951   :  { %776 = vmatpush.msrb.mxu2 %v1370_v29 }
 0x953   :  { %777 = vmatpush.msrb.mxu2 %v1377_v31 }
 0x955   :  { %778 = vmatpush.msrb.mxu2 %v1386_v33 }
 0x957   :  { %v578_v50 = vpop.permute.xlu0 %577  ;;  %779 = vmatpush.msrb.mxu2 %v1399_v36 }
 0x958   :  { %1130 = vmatmul.msk.f32.vlgmr.msrb.gmra.mxu3 %vm149_vm4, %v578_v50  ;;  %1131 = vmatmul.msk.f32.vlgmr.msra.gmra.mxu1 %vm149_vm4, %v578_v50 }
 0x959   :  { %825 = vmatpush.msrb.mxu3 %v1375_v30  ;;  %867 = vmatpush.msra.mxu1 %v1312_v1 }
 0x95b   :  { %826 = vmatpush.msrb.mxu3 %v1384_v32  ;;  %868 = vmatpush.msra.mxu1 %v1320_v3 }
 0x95d   :  { %827 = vmatpush.msrb.mxu3 %v1391_v34  ;;  %869 = vmatpush.msra.mxu1 %v1332_v6 }
 0x95f   :  { %828 = vmatpush.msrb.mxu3 %v1404_v37  ;;  %870 = vmatpush.msra.mxu1 %v1339_v7 }
 0x9d3   :  { %v549_v56 = vpop.f32.mrf.mxu2 }
 0x9d5   :  { %v640_v53 = vpop.f32.mrf.mxu1 }
 0x9d6   :  { %v670_v54 = vadd.f32 %v640_v53, %v119_v52 }
 0x9d8   :  { %v671_v55 = vmul.f32 %v670_v54, %v1357_v15 }
 0x9da   :  { %1183 = vtanh.f32 %v671_v55 }
 0x9db   :  { %v598_v57 = vpop.f32.mrf.mxu3 }
 0x9dc   :  { %v599_v58 = vadd.f32 %v598_v57, %v549_v56 }
 0x9de   :  { %v601_v59 = vadd.f32 %v1437_v44, %v599_v58 }
 0x9e0   :  { %v1184_v60 = vpop.eup %1183  ;;  %v602_v61 = vmul.f32 %v601_v59, %v1357_v15 }
 0x9e1   :  { %v673_v62 = vmul.f32 %v1184_v60, %v1357_v15 }
 0x9e2   :  { %1185 = vtanh.f32 %v602_v61 }
 0x9e3   :  { %v674_v63 = vadd.f32 %v673_v62, %v1360_v20 }
 0x9e5   :  { %677 = vrot.lane.b32.xlu2 %v674_v63, %s1250_s3  ;;  %v675_v12 = vmul.f32 %v674_v63, %v569_v35 }
 0x9e8   :  { %v1186_v0 = vpop.eup %1185 }
 0x9e9   :  { %v604_v2 = vmul.f32 %v1186_v0, %v1357_v15  ;;  %v56_v0 = vld [vmem:[%s1670_s0 + $0x30] sm:$0xff] }
 0x9ea   :  { %1119 = vmatmul.msk.f32.gmra.mxu0 %vm64_vm0, %v56_v0 }
 0x9eb   :  { %v605_v4 = vadd.f32 %v604_v2, %v1360_v20 }
 0x9ed   :  { %608 = vrot.lane.b32.xlu1 %v605_v4, %s1250_s3  ;;  %v606_v17 = vmul.f32 %v605_v4, %v500_v41 }
 0xa3f   :  { %v678_v5 = vpop.permute.xlu2 %677 }
 0xa40   :  { %v680_v8 = vmul.f32 %v678_v5, %v674_v63 }
 0xa42   :  { %682 = vrot.lane.b32.xlu1 %v680_v8, %s1251_s30 }
 0xa5f   :  { %v609_v9 = vpop.permute.xlu1 %608 }
 0xa60   :  { %v611_v10 = vmul.f32 %v609_v9, %v605_v4 }
 0xa62   :  { %613 = vrot.lane.b32.xlu0 %v611_v10, %s1251_s30 }
 0xab4   :  { %v683_v13 = vpop.permute.xlu1 %682 }
 0xab5   :  { %v685_v14 = vadd.f32 %v683_v13, %v675_v12 }
 0xab7   :  { %1187 = vtanh.f32 %v685_v14 }
 0xabd   :  { %v1188_v16 = vpop.eup %1187 }
 0xabe   :  { %688 = vrot.lane.b32.xlu0 %v1188_v16, %s1250_s3 }
 0xad4   :  { %v614_v18 = vpop.permute.xlu0 %613 }
 0xad5   :  { %v616_v19 = vadd.f32 %v614_v18, %v606_v17 }
 0xad7   :  { %1189 = vtanh.f32 %v616_v19 }
 0xadd   :  { %v1190_v21 = vpop.eup %1189 }
 0xade   :  { %619 = vrot.lane.b32.xlu2 %v1190_v21, %s1250_s3 }
 0xb30   :  { %v689_v23 = vpop.permute.xlu0 %688 }
 0xb31   :  { %v691_v24 = vmul.f32 %v689_v23, %v674_v63 }
 0xb33   :  { %693 = vrot.lane.b32.xlu2 %v691_v24, %s1251_s30 }
 0xb38   :  { %v620_v25 = vpop.permute.xlu2 %619 }
 0xb39   :  { %v622_v26 = vmul.f32 %v620_v25, %v605_v4 }
 0xb3b   :  { %644 = vrot.lane.b32.xlu1 %v622_v26, %s1251_s30 }
 0xb8d   :  { %v694_v27 = vpop.permute.xlu2 %693 }
 0xb8e   :  { %1133 = vmatmul.msk.f32.vlgmr.msra.gmra.mxu3 %vm149_vm4, %v694_v27  ;;  %1134 = vmatmul.msk.f32.vlgmr.msrb.gmra.mxu1 %vm149_vm4, %v694_v27 }
 0xb8f   :  { %941 = vmatpush.msra.mxu3 %v1375_v30  ;;  %983 = vmatpush.msrb.mxu1 %v1312_v1  ;;  %v121_v1 = vpop.f32.mrf.mxu0 }
 0xb91   :  { %942 = vmatpush.msra.mxu3 %v1384_v32  ;;  %984 = vmatpush.msrb.mxu1 %v1320_v3  ;;  %v122_v3 = vadd.f32 %v1354_v11, %v121_v1 }
 0xb93   :  { %943 = vmatpush.msra.mxu3 %v1391_v34  ;;  %985 = vmatpush.msrb.mxu1 %v1332_v6 }
 0xb95   :  { %944 = vmatpush.msra.mxu3 %v1404_v37  ;;  %986 = vmatpush.msrb.mxu1 %v1339_v7 }
 0xb97   :  { %v124_v9 = vpop.f32.mrf.mxu0 }
 0xbad   :  { %v645_v28 = vpop.permute.xlu1 %644 }
 0xbae   :  { %1132 = vmatmul.msk.f32.vlgmr.msra.gmra.mxu2 %vm149_vm4, %v645_v28 }
 0xbaf   :  { %892 = vmatpush.msra.mxu2 %v1370_v29 }
 0xbb1   :  { %893 = vmatpush.msra.mxu2 %v1377_v31 }
 0xbb3   :  { %894 = vmatpush.msra.mxu2 %v1386_v33 }
 0xbb5   :  { %895 = vmatpush.msra.mxu2 %v1399_v36 }
 0xc0b   :  { %v756_v35 = vpop.f32.mrf.mxu1 }
 0xc0c   :  { %v786_v6 = vadd.f32 %v756_v35, %v122_v3 }
 0xc0e   :  { %v787_v38 = vmul.f32 %v786_v6, %v1357_v15 }
 0xc10   :  { %1191 = vtanh.f32 %v787_v38 }
 0xc11   :  { %v714_v41 = vpop.f32.mrf.mxu3 }
 0xc16   :  { %v1192_v7 = vpop.eup %1191 }
 0xc17   :  { %v789_v39 = vmul.f32 %v1192_v7, %v1357_v15  ;;  %v57_v7 = vld [vmem:[%s1670_s0 + $0x38] sm:$0xff] }
 0xc18   :  { %1120 = vmatmul.msk.f32.gmra.mxu0 %vm64_vm0, %v57_v7 }
 0xc19   :  { %v790_v40 = vadd.f32 %v789_v39, %v1360_v20 }
 0xc1b   :  { %793 = vrot.lane.b32.xlu1 %v790_v40, %s1250_s3  ;;  %v791_v54 = vmul.f32 %v790_v40, %v685_v14 }
 0xc31   :  { %v665_v42 = vpop.f32.mrf.mxu2 }
 0xc32   :  { %v715_v43 = vadd.f32 %v714_v41, %v665_v42 }
 0xc34   :  { %v717_v45 = vadd.f32 %v1437_v44, %v715_v43 }
 0xc36   :  { %v718_v46 = vmul.f32 %v717_v45, %v1357_v15 }
 0xc38   :  { %1193 = vtanh.f32 %v718_v46 }
 0xc3e   :  { %v1194_v47 = vpop.eup %1193 }
 0xc3f   :  { %v720_v48 = vmul.f32 %v1194_v47, %v1357_v15 }
 0xc41   :  { %v721_v49 = vadd.f32 %v720_v48, %v1360_v20 }
 0xc43   :  { %724 = vrot.lane.b32.xlu0 %v721_v49, %s1250_s3  ;;  %v722_v58 = vmul.f32 %v721_v49, %v616_v19 }
 0xc8d   :  { %v794_v50 = vpop.permute.xlu1 %793 }
 0xc8e   :  { %v796_v51 = vmul.f32 %v794_v50, %v790_v40 }
 0xc90   :  { %798 = vrot.lane.b32.xlu0 %v796_v51, %s1251_s30 }
 0xc95   :  { %v127_v43 = vpop.f32.mrf.mxu0 }
 0xc96   :  { %v128_v45 = vadd.f32 %v1354_v11, %v127_v43 }
 0xcb5   :  { %v725_v52 = vpop.permute.xlu0 %724 }
 0xcb6   :  { %v727_v53 = vmul.f32 %v725_v52, %v721_v49 }
 0xcb8   :  { %729 = vrot.lane.b32.xlu2 %v727_v53, %s1251_s30 }
 0xd02   :  { %v799_v55 = vpop.permute.xlu0 %798 }
 0xd03   :  { %v801_v56 = vadd.f32 %v799_v55, %v791_v54 }
 0xd05   :  { %1195 = vtanh.f32 %v801_v56 }
 0xd0b   :  { %v1196_v57 = vpop.eup %1195 }
 0xd0c   :  { %804 = vrot.lane.b32.xlu2 %v1196_v57, %s1250_s3 }
 0xd12   :  { %v730_v59 = vpop.permute.xlu2 %729 }
 0xd13   :  { %v732_v60 = vadd.f32 %v730_v59, %v722_v58 }
 0xd15   :  { %1197 = vtanh.f32 %v732_v60 }
 0xd1b   :  { %v1198_v61 = vpop.eup %1197 }
 0xd1c   :  { %735 = vrot.lane.b32.xlu1 %v1198_v61, %s1250_s3 }
 0xd66   :  { %v805_v62 = vpop.permute.xlu2 %804 }
 0xd67   :  { %v807_v63 = vmul.f32 %v805_v62, %v790_v40 }
 0xd69   :  { %809 = vrot.lane.b32.xlu1 %v807_v63, %s1251_s30 }
 0xd8e   :  { %v736_v2 = vpop.permute.xlu1 %735 }
 0xd8f   :  { %v738_v4 = vmul.f32 %v736_v2, %v721_v49 }
 0xd91   :  { %760 = vrot.lane.b32.xlu0 %v738_v4, %s1251_s30 }
 0xddb   :  { %v810_v5 = vpop.permute.xlu1 %809 }
 0xddc   :  { %1136 = vmatmul.msk.f32.vlgmr.msrb.gmra.mxu3 %vm149_vm4, %v810_v5  ;;  %1137 = vmatmul.msk.f32.vlgmr.msra.gmra.mxu1 %vm149_vm4, %v810_v5 }
 0xddd   :  { %1057 = vmatpush.msrb.mxu3 %v1375_v30  ;;  %v125_v30 = vadd.f32 %v1354_v11, %v124_v9 }
 0xddf   :  { %1058 = vmatpush.msrb.mxu3 %v1384_v32 }
 0xde1   :  { %1059 = vmatpush.msrb.mxu3 %v1391_v34 }
 0xde3   :  { %1060 = vmatpush.msrb.mxu3 %v1404_v37 }
 0xe03   :  { %v761_v8 = vpop.permute.xlu0 %760 }
 0xe04   :  { %1135 = vmatmul.msk.f32.vlgmr.msrb.gmra.mxu2 %vm149_vm4, %v761_v8 }
 0xe05   :  { %1008 = vmatpush.msrb.mxu2 %v1370_v29 }
 0xe07   :  { %1009 = vmatpush.msrb.mxu2 %v1377_v31 }
 0xe09   :  { %1010 = vmatpush.msrb.mxu2 %v1386_v33 }
 0xe0b   :  { %1011 = vmatpush.msrb.mxu2 %v1399_v36 }
 0xe59   :  { %v872_v10 = vpop.f32.mrf.mxu1 }
 0xe5a   :  { %v902_v32 = vadd.f32 %v872_v10, %v125_v30 }
 0xe5c   :  { %v903_v34 = vmul.f32 %v902_v32, %v1357_v15 }
 0xe5e   :  { %1199 = vtanh.f32 %v903_v34 }
 0xe5f   :  { %v830_v29 = vpop.f32.mrf.mxu3 }
 0xe64   :  { %v1200_v37 = vpop.eup %1199 }
 0xe65   :  { %v905_v12 = vmul.f32 %v1200_v37, %v1357_v15 }
 0xe67   :  { %v906_v13 = vadd.f32 %v905_v12, %v1360_v20 }
 0xe69   :  { %909 = vrot.lane.b32.xlu0 %v906_v13, %s1250_s3  ;;  %v907_v24 = vmul.f32 %v906_v13, %v801_v56 }
 0xe87   :  { %v781_v31 = vpop.f32.mrf.mxu2 }
 0xe88   :  { %v831_v33 = vadd.f32 %v830_v29, %v781_v31 }
 0xe8a   :  { %v833_v36 = vadd.f32 %v1437_v44, %v831_v33 }
 0xe8c   :  { %v834_v14 = vmul.f32 %v833_v36, %v1357_v15 }
 0xe8e   :  { %1201 = vtanh.f32 %v834_v14 }
 0xe94   :  { %v1202_v16 = vpop.eup %1201 }
 0xe95   :  { %v836_v17 = vmul.f32 %v1202_v16, %v1357_v15 }
 0xe97   :  { %v837_v18 = vadd.f32 %v836_v17, %v1360_v20 }
 0xe99   :  { %840 = vrot.lane.b32.xlu2 %v837_v18, %s1250_s3  ;;  %v838_v28 = vmul.f32 %v837_v18, %v732_v60 }
 0xedb   :  { %v910_v19 = vpop.permute.xlu0 %909 }
 0xedc   :  { %v912_v21 = vmul.f32 %v910_v19, %v906_v13  ;;  %v1153_v19 = vld [vmem:[%s1677_s7] ss:$0 sm:$0xff] }
 0xede   :  { %914 = vrot.lane.b32.xlu2 %v912_v21, %s1251_s30 }
 0xef3   :  { %v841_v22 = vpop.permute.xlu2 %840 }
 0xef4   :  { %v843_v23 = vmul.f32 %v841_v22, %v837_v18 }
 0xef6   :  { %845 = vrot.lane.b32.xlu1 %v843_v23, %s1251_s30 }
 0xf38   :  { %v915_v25 = vpop.permute.xlu2 %914 }
 0xf39   :  { %v917_v26 = vadd.f32 %v915_v25, %v907_v24 }
 0xf3b   :  { %1203 = vtanh.f32 %v917_v26 }
 0xf41   :  { %v1204_v27 = vpop.eup %1203 }
 0xf42   :  { %920 = vrot.lane.b32.xlu1 %v1204_v27, %s1250_s3 }
 0xf68   :  { %v846_v1 = vpop.permute.xlu1 %845 }
 0xf69   :  { %v848_v3 = vadd.f32 %v846_v1, %v838_v28 }
 0xf6b   :  { %1205 = vtanh.f32 %v848_v3 }
 0xf71   :  { %v1206_v35 = vpop.eup %1205 }
 0xf72   :  { %851 = vrot.lane.b32.xlu0 %v1206_v35, %s1250_s3 }
 0xfb4   :  { %v921_v6 = vpop.permute.xlu1 %920 }
 0xfb5   :  { %v923_v38 = vmul.f32 %v921_v6, %v906_v13 }
 0xfb7   :  { %925 = vrot.lane.b32.xlu0 %v923_v38, %s1251_s30 }
 0xfe4   :  { %v852_v39 = vpop.permute.xlu0 %851 }
 0xfe5   :  { %v854_v40 = vmul.f32 %v852_v39, %v837_v18 }
 0xfe7   :  { %876 = vrot.lane.b32.xlu2 %v854_v40, %s1251_s30 }
0x1029   :  { %v926_v41 = vpop.permute.xlu0 %925 }
0x102a   :  { %1139 = vmatmul.msk.f32.vlgmr.msra.gmra.mxu3 %vm149_vm4, %v926_v41  ;;  %1140 = vmatmul.msk.f32.vlgmr.msrb.gmra.mxu1 %vm149_vm4, %v926_v41 }
0x1041   :  { %v877_v42 = vpop.permute.xlu2 %876 }
0x1042   :  { %1138 = vmatmul.msk.f32.vlgmr.msra.gmra.mxu2 %vm149_vm4, %v877_v42 }
0x10a7   :  { %v988_v46 = vpop.f32.mrf.mxu1 }
0x10a8   :  { %v1018_v47 = vadd.f32 %v988_v46, %v128_v45 }
0x10aa   :  { %v1019_v48 = vmul.f32 %v1018_v47, %v1357_v15 }
0x10ac   :  { %1207 = vtanh.f32 %v1019_v48 }
0x10ad   :  { %v946_v52 = vpop.f32.mrf.mxu3 }
0x10b2   :  { %v1208_v49 = vpop.eup %1207 }
0x10b3   :  { %v1021_v50 = vmul.f32 %v1208_v49, %v1357_v15 }
0x10b5   :  { %v1022_v51 = vadd.f32 %v1021_v50, %v1360_v20 }
0x10b7   :  { %1025 = vrot.lane.b32.xlu2 %v1022_v51, %s1250_s3  ;;  %v1023_v63 = vmul.f32 %v1022_v51, %v917_v26 }
0x10c5   :  { %v897_v53 = vpop.f32.mrf.mxu2 }
0x10c6   :  { %v947_v54 = vadd.f32 %v946_v52, %v897_v53 }
0x10c8   :  { %v949_v55 = vadd.f32 %v1437_v44, %v947_v54 }
0x10ca   :  { %v950_v56 = vmul.f32 %v949_v55, %v1357_v15 }
0x10cc   :  { %1209 = vtanh.f32 %v950_v56 }
0x10d2   :  { %v1210_v11 = vpop.eup %1209 }
0x10d3   :  { %v952_v57 = vmul.f32 %v1210_v11, %v1357_v15 }
0x10d5   :  { %v953_v58 = vadd.f32 %v952_v57, %v1360_v20 }
0x10d7   :  { %956 = vrot.lane.b32.xlu1 %v953_v58, %s1250_s3  ;;  %v954_v5 = vmul.f32 %v953_v58, %v848_v3  ;;  %v1154_v3 = vld [vmem:[#allocation3] ss:$0 sm:$0xff] }
0x1111   :  { %v1026_v59 = vpop.permute.xlu2 %1025 }
0x1112   :  { %v1028_v60 = vmul.f32 %v1026_v59, %v1022_v51 }
0x1114   :  { %1030 = vrot.lane.b32.xlu1 %v1028_v60, %s1251_s30 }
0x1149   :  { %v957_v61 = vpop.permute.xlu1 %956 }
0x114a   :  { %v959_v62 = vmul.f32 %v957_v61, %v953_v58 }
0x114c   :  { %961 = vrot.lane.b32.xlu0 %v959_v62, %s1251_s30 }
0x1186   :  { %v1031_v0 = vpop.permute.xlu1 %1030 }
0x1187   :  { %v1033_v2 = vadd.f32 %v1031_v0, %v1023_v63 }
0x1189   :  { %1211 = vtanh.f32 %v1033_v2 }
0x118f   :  { %v1212_v4 = vpop.eup %1211 }
0x1190   :  { %1036 = vrot.lane.b32.xlu0 %v1212_v4, %s1250_s3 }
0x11be   :  { %v962_v8 = vpop.permute.xlu0 %961 }
0x11bf   :  { %v964_v9 = vadd.f32 %v962_v8, %v954_v5 }
0x11c1   :  { %1213 = vtanh.f32 %v964_v9 }
0x11c7   :  { %v1214_v30 = vpop.eup %1213 }
0x11c8   :  { %967 = vrot.lane.b32.xlu2 %v1214_v30, %s1250_s3 }
0x1202   :  { %v1037_v10 = vpop.permute.xlu0 %1036 }
0x1203   :  { %v1039_v32 = vmul.f32 %v1037_v10, %v1022_v51 }
0x1205   :  { %1041 = vrot.lane.b32.xlu2 %v1039_v32, %s1251_s30 }
0x1222   :  { %v968_v34 = vpop.permute.xlu2 %967 }
0x1223   :  { %v970_v37 = vmul.f32 %v968_v34, %v953_v58 }
0x1225   :  { %992 = vrot.lane.b32.xlu1 %v970_v37, %s1251_s30 }
0x125f   :  { %v1042_v12 = vpop.permute.xlu2 %1041 }
0x1260   :  { %1142 = vmatmul.msk.f32.vlgmr.msrb.gmra.mxu3 %vm149_vm4, %v1042_v12 }
0x1297   :  { %v993_v13 = vpop.permute.xlu1 %992 }
0x1298   :  { %1141 = vmatmul.msk.f32.vlgmr.msrb.gmra.mxu2 %vm149_vm4, %v993_v13 }
0x12e3   :  { %v1062_v29 = vpop.f32.mrf.mxu3 }
0x131b   :  { %v1013_v31 = vpop.f32.mrf.mxu2 }
0x131c   :  { %v1063_v33 = vadd.f32 %v1062_v29, %v1013_v31 }
0x131e   :  { %v1065_v36 = vadd.f32 %v1437_v44, %v1063_v33 }
0x1320   :  { %v1066_v14 = vmul.f32 %v1065_v36, %v1357_v15 }
0x1322   :  { %1215 = vtanh.f32 %v1066_v14 }
0x1328   :  { %v1216_v16 = vpop.eup %1215 }
0x1329   :  { %v1068_v17 = vmul.f32 %v1216_v16, %v1357_v15 }
0x132b   :  { %v1069_v18 = vadd.f32 %v1068_v17, %v1360_v20 }
0x132d   :  { %1072 = vrot.lane.b32.xlu0 %v1069_v18, %s1250_s3  ;;  %v1070_v44 = vmul.f32 %v1069_v18, %v964_v9 }
0x1335   :  { %1090 = vrot.lane.b32.xlu0 %v1153_v19, %s1252_s2 }
0x139f   :  { %v1073_v21 = vpop.permute.xlu0 %1072 }
0x13a0   :  { %v1075_v22 = vmul.f32 %v1073_v21, %v1069_v18 }
0x13a2   :  { %1077 = vrot.lane.b32.xlu1 %v1075_v22, %s1251_s30 }
0x13a7   :  { %v1091_v20 = vpop.permute.xlu0 %1090 }
0x1414   :  { %v1078_v23 = vpop.permute.xlu1 %1077 }
0x1415   :  { %v1080_v24 = vadd.f32 %v1078_v23, %v1070_v44 }
0x1417   :  { %1217 = vtanh.f32 %v1080_v24 }
0x141d   :  { %v1218_v25 = vpop.eup %1217 }
0x141e   :  { %1083 = vrot.lane.b32.xlu2 %v1218_v25, %s1250_s3 }
0x1478   :  { %v1084_v15 = vpop.permute.xlu2 %1083 }
0x1479   :  { %v1086_v26 = vmul.f32 %v1084_v15, %v1069_v18 }
0x147b   :  { %v1093_v27 = vmul.f32 %v1091_v20, %v1086_v26 }
0x147d   :  { %1095 = vrot.lane.b32.xlu1 %v1093_v27, %s1251_s30 }
0x14ef   :  { %v1096_v28 = vpop.permute.xlu1 %1095 }
0x14f0   :  { %v1098_v1 = vsel %vm149_vm4, %v1096_v28, 0.0 }
0x14f1   :  { %1099 = vadd.xlane.f32.xlu2 %v1098_v1 }
0x1564   :  { %v1100_v35 = vpop.xlane.xlu2 %1099 }
0x1565   :  { %v1105_v6 = vadd.f32 %v1154_v3, %v1100_v35 }
0x1567   :  { %1107 = vst.msk [vmem:[%s1679_s9] sm:$0xff] %vm1106_vm5, %v1105_v6 }
0x1568   :  { %1112 = vsyncpa [#allocation5], 1 }

</bundles_post_ra>
